<compile_context>
chip_gen: v7x
topology: tpu7x:2x2x1
jax: 0.10.0
libtpu: 0.0.40
codegen_flags: <defaults>
</compile_context>

<pallas_src>
import functools

import jax
import jax.numpy as jnp
from jax.experimental import pallas as pl
from jax.experimental.pallas import tpu as pltpu


# ----------------------------------------------------------------------------
# Pallas kernels
# ----------------------------------------------------------------------------

def make_conv_fused_kernel(B):
    """Per batch: c = W @ patches + b ; a = c + leaky_relu(c) ; s = a + residual."""

    def kernel(p_ref, w_ref, b_ref, r_ref, a_ref, s_ref):
        w = w_ref[...]                       # (C, CKp)  bf16
        bias = b_ref[...]                    # (C, 1)    f32
        for b in range(B):                   # B is tiny & static -> unrolled
            c = jnp.dot(w, p_ref[b], preferred_element_type=jnp.float32) + bias
            a = c + jnp.where(c >= 0.0, c, 0.01 * c)       # c + LeakyReLU(c)
            a_ref[b] = a
            s_ref[b] = a + r_ref[b]

    return kernel


def make_conv_plain_kernel(B):
    """Plain conv-as-matmul (stride-2 downscale conv)."""

    def kernel(p_ref, w_ref, b_ref, o_ref):
        w = w_ref[...]
        bias = b_ref[...]
        for b in range(B):
            o_ref[b] = jnp.dot(w, p_ref[b], preferred_element_type=jnp.float32) + bias

    return kernel


def make_mamba_kernel(B, C, L, rank, n, k):
    pad = (k - 1) // 2
    BC = B * C

    def silu(v):
        # x * sigmoid(x); sigmoid via tanh -> EUP slot, numerically stable.
        return v * (0.5 * (jnp.tanh(0.5 * v) + 1.0))

    def shift_lanes(v, off):
        # v: (C, L) -> t with t[:, l] = v[:, l + off], zero filled at the edges.
        if off == 0:
            return v
        if off < 0:
            m = -off
            return jnp.concatenate(
                [jnp.zeros((C, m), v.dtype), v[:, :L - m]], axis=1)
        return jnp.concatenate(
            [v[:, off:], jnp.zeros((C, off), v.dtype)], axis=1)

    def kernel(x_ref, g_ref, be_ref, wlr_ref, blr_ref,
               w1d_ref, b1d_ref, wx_ref, bx_ref, wdt_ref, bdt_ref,
               a_ref, d_ref, wo_ref, bo_ref,
               o_ref, xl_sc, y_sc):
        # ---- LayerNorm over L on full (B*C, L) = (8, 128) vregs ----
        x2 = x_ref[...]
        mean = jnp.mean(x2, axis=-1, keepdims=True)
        xc = x2 - mean
        var = jnp.mean(xc * xc, axis=-1, keepdims=True)
        xn = xc * jax.lax.rsqrt(var + 1e-5) * g_ref[...] + be_ref[...]

        # ---- fused left|right linear: one (BC, L) x (L, 2L) MXU pass ----
        xlr = jnp.dot(xn.astype(jnp.bfloat16), wlr_ref[...],
                      preferred_element_type=jnp.float32) + blr_ref[...]
        xl = xlr[:, :L]                      # left branch (pre conv1d)
        xr = silu(xlr[:, L:])                # right (gating) branch

        # ---- Conv1d along L (full CxC channel mix, 'same' zero padding) ----
        # width-L shifted taps + one (C, k*C) x (k*C, L) matmul per batch.
        w1d = w1d_ref[...]                   # (C, k*C)
        b1d = b1d_ref[...]                   # (C, 1)
        for b in range(B):
            xb = xl[b * C:(b + 1) * C, :]
            stacked = jnp.concatenate(
                [shift_lanes(xb, t - pad) for t in range(k)], axis=0)  # (k*C, L)
            xl_sc[b * C:(b + 1) * C, :] = (
                jnp.dot(w1d, stacked, preferred_element_type=jnp.float32) + b1d)
        u = silu(xl_sc[...])                 # SSM input, (BC, L)

        # ---- SSM projections (full vregs) ----
        xdbl = jnp.dot(u.astype(jnp.bfloat16), wx_ref[...],
                       preferred_element_type=jnp.float32) + bx_ref[...]   # (BC, R2)
        dr = xdbl[:, :rank]
        Bm = xdbl[:, rank:rank + n]
        Cm = xdbl[:, rank + n:rank + 2 * n]
        dlin = jnp.dot(dr, wdt_ref[...],
                       preferred_element_type=jnp.float32) + bdt_ref[...]  # (BC, L)
        # numerically stable softplus
        delta = jnp.maximum(dlin, 0.0) + jnp.log(1.0 + jnp.exp(-jnp.abs(dlin)))

        # ---- selective scan over the channel ("sequence") axis ----
        A_col = a_ref[...]                   # (n, 1) = -exp(A_log), same for all l
        for b in range(B):
            lo = b * C
            db = delta[lo:lo + C, :]
            ub = u[lo:lo + C, :]
            Bb = Bm[lo:lo + C, :]
            Cb = Cm[lo:lo + C, :]
            state = jnp.zeros((n, L), jnp.float32)
            for i in range(C):
                d_i = db[i:i + 1, :]                              # (1, L)
                dA_i = jnp.exp(d_i * A_col)                       # (n, L)
                dBu_i = d_i * Bb[i][:, None] * ub[i:i + 1, :]     # (n, L)
                state = dA_i * state + dBu_i
                y_sc[lo + i:lo + i + 1, :] = jnp.sum(
                    state * Cb[i][:, None], axis=0, keepdims=True)

        # ---- + u*D, gate, output projection ----
        y = y_sc[...] + u * d_ref[...]
        gate = y * xr
        o_ref[...] = (jnp.dot(gate.astype(jnp.bfloat16), wo_ref[...],
                              preferred_element_type=jnp.float32) + bo_ref[...])

    return kernel


# ----------------------------------------------------------------------------
# Plain-JAX glue: im2col for Conv3d (emitted directly as (B, CK, P), K padded)
# ----------------------------------------------------------------------------

def _round_up(x, m):
    return ((x + m - 1) // m) * m


def im2col3d(x, k, pad, stride):
    """x: (B, C, W, H, D) -> patches (B, CKp, P) in bf16, feature order (ci,kw,kh,kd),
    with the contraction dim zero-padded up to a multiple of 128."""
    B, C, W, H, D = x.shape
    xp = jnp.pad(x, ((0, 0), (0, 0), (pad, pad), (pad, pad), (pad, pad)))
    Wo = (W + 2 * pad - k) // stride + 1
    Ho = (H + 2 * pad - k) // stride + 1
    Do = (D + 2 * pad - k) // stride + 1
    cols = []
    for kw in range(k):
        for kh in range(k):
            for kd in range(k):
                cols.append(xp[:, :,
                               kw:kw + stride * Wo:stride,
                               kh:kh + stride * Ho:stride,
                               kd:kd + stride * Do:stride])
    col = jnp.stack(cols, axis=2)                        # (B, C, k^3, Wo, Ho, Do)
    CK = C * k ** 3
    col = col.reshape(B, CK, Wo * Ho * Do)               # (B, CK, P) -- no transpose
    CKp = _round_up(CK, 128)
    col = jnp.pad(col, ((0, 0), (0, CKp - CK), (0, 0)))
    return col.astype(jnp.bfloat16), (Wo, Ho, Do)


def prep_conv_weight(weight, bias):
    """(Cout, Cin, k, k, k) -> bf16 (Cout, CKp) with zero-padded K, bias as (Cout, 1)."""
    Cout = weight.shape[0]
    CK = weight.size // Cout
    CKp = _round_up(CK, 128)
    Wm = weight.reshape(Cout, CK)
    Wm = jnp.pad(Wm, ((0, 0), (0, CKp - CK))).astype(jnp.bfloat16)
    return Wm, bias.reshape(Cout, 1).astype(jnp.float32)


# ----------------------------------------------------------------------------
# Wrappers around pallas_call (no grid: whole problem fits VMEM, batch folded)
# ----------------------------------------------------------------------------

def conv3d_fused(x, res_flat, weight, bias):
    """Stride-1 'same' conv.  Returns (a, s), both (B, Cout, P) with P = W*H*D,
    where a = conv(x) + leaky_relu(conv(x)) and s = a + res_flat."""
    B = x.shape[0]
    k = weight.shape[-1]
    pad = (k - 1) // 2
    patches, (Wo, Ho, Do) = im2col3d(x, k, pad, 1)
    P = Wo * Ho * Do
    Cout = weight.shape[0]
    Wm, bcol = prep_conv_weight(weight, bias)

    a, s = pl.pallas_call(
        make_conv_fused_kernel(B),
        out_shape=(jax.ShapeDtypeStruct((B, Cout, P), jnp.float32),
                   jax.ShapeDtypeStruct((B, Cout, P), jnp.float32)),
    )(patches, Wm, bcol, res_flat)
    return a, s


def conv3d_plain(x, weight, bias, stride):
    B = x.shape[0]
    k = weight.shape[-1]
    pad = (k - 1) // 2
    patches, (Wo, Ho, Do) = im2col3d(x, k, pad, stride)
    P = Wo * Ho * Do
    Cout = weight.shape[0]
    Wm, bcol = prep_conv_weight(weight, bias)

    out = pl.pallas_call(
        make_conv_plain_kernel(B),
        out_shape=jax.ShapeDtypeStruct((B, Cout, P), jnp.float32),
    )(patches, Wm, bcol)
    return out.reshape(B, Cout, Wo, Ho, Do)


def mamba_core(x2, p, *, B, C, rank, n, k):
    """x2: (B*C, L) -> (B*C, L).  Fused layernorm/linears/conv1d/silu/ssm/gate/out."""
    L = x2.shape[-1]
    kernel = make_mamba_kernel(B, C, L, rank, n, k)

    args = (x2,
            p["ln_g"], p["ln_b"],
            p["Wlr"], p["blr"],
            p["w1d"], p["b1d"],
            p["Wx"], p["bx"],
            p["Wdt"], p["bdt"],
            p["A_col"], p["D"],
            p["Wo"], p["bo"])

    return pl.pallas_call(
        kernel,
        out_shape=jax.ShapeDtypeStruct((B * C, L), jnp.float32),
        scratch_shapes=[pltpu.VMEM((B * C, L), jnp.float32),   # conv1d result
                        pltpu.VMEM((B * C, L), jnp.float32)],  # scan output rows
    )(*args)


# ----------------------------------------------------------------------------
# Full U_MambaBlockDownscale forward
# ----------------------------------------------------------------------------

@functools.partial(jax.jit, static_argnames=("rank", "n", "k"))
def u_mamba_block_downscale(x, params, *, rank, n, k):
    B, C, W, H, Hid = x.shape
    L = W * H * Hid

    # --- U_MambaLayer conv stage (shared weights, applied twice) ---
    # a1 = conv(x) + leaky(conv(x));  s1 = a1 + x
    a1, s1 = conv3d_fused(x, x.reshape(B, C, L),
                          params["conv_w"], params["conv_b"])
    # a2 = conv(s1) + leaky(conv(s1)); s2 = a2 + a1
    _, s2 = conv3d_fused(s1.reshape(B, C, W, H, Hid), a1,
                         params["conv_w"], params["conv_b"])

    # --- fused Mamba stage on the flattened (B*C, L) layout (free reshape) ---
    y = mamba_core(s2.reshape(B * C, L), params, B=B, C=C, rank=rank, n=n, k=k)

    # --- stride-2 downscale conv ---
    return conv3d_plain(y.reshape(B, C, W, H, Hid),
                        params["ds_w"], params["ds_b"], stride=2)


def init_params(key, C, W, H, Hid, rank, n, k):
    L = W * H * Hid
    R2 = rank + 2 * n
    ks = jax.random.split(key, 20)
    nrm = jax.random.normal

    conv_w = 0.1 * nrm(ks[0], (C, C, k, k, k), jnp.float32)
    conv_b = 0.1 * nrm(ks[1], (C,), jnp.float32)
    conv1d_w = 0.1 * nrm(ks[2], (C, C, k), jnp.float32)
    conv1d_b = 0.1 * nrm(ks[3], (C,), jnp.float32)

    Wl = nrm(ks[4], (L, L), jnp.float32) / jnp.sqrt(L)
    bl = 0.1 * nrm(ks[5], (L,), jnp.float32)
    Wr = nrm(ks[6], (L, L), jnp.float32) / jnp.sqrt(L)
    br = 0.1 * nrm(ks[7], (L,), jnp.float32)
    Wo = nrm(ks[8], (L, L), jnp.float32) / jnp.sqrt(L)
    bo = 0.1 * nrm(ks[9], (L,), jnp.float32)
    Wx = nrm(ks[10], (R2, L), jnp.float32) / jnp.sqrt(L)
    bx = 0.1 * nrm(ks[11], (R2,), jnp.float32)
    Wdt = nrm(ks[12], (L, rank), jnp.float32) / jnp.sqrt(rank)
    bdt = 0.1 * nrm(ks[13], (L,), jnp.float32)

    ln_g = 1.0 + 0.05 * nrm(ks[14], (L,), jnp.float32)
    ln_b = 0.05 * nrm(ks[15], (L,), jnp.float32)

    ds_w = 0.1 * nrm(ks[16], (C, C, k, k, k), jnp.float32)
    ds_b = 0.1 * nrm(ks[17], (C,), jnp.float32)

    # A = arange(1..n) (identical for every position l); A_log = log(A + 1e-15);
    # the scan uses -exp(A_log) -> pass it as an (n, 1) column, broadcast in-kernel.
    A_col = -jnp.exp(jnp.log(jnp.arange(1, n + 1, dtype=jnp.float32) + 1e-15))
    D = jnp.ones((1, L), jnp.float32)

    # PyTorch Linear computes x @ W.T + b -> store transposed weights.
    # Fuse left|right into a single (L, 2L) weight for one MXU pass.
    Wlr = jnp.concatenate([Wl.T, Wr.T], axis=1).astype(jnp.bfloat16)
    blr = jnp.concatenate([bl, br]).reshape(1, 2 * L)

    return {
        "conv_w": conv_w, "conv_b": conv_b,
        "ds_w": ds_w, "ds_b": ds_b,
        "ln_g": ln_g.reshape(1, L), "ln_b": ln_b.reshape(1, L),
        "Wlr": Wlr, "blr": blr,
        "Wo": Wo.T.astype(jnp.bfloat16), "bo": bo.reshape(1, L),
        "Wx": Wx.T.astype(jnp.bfloat16), "bx": bx.reshape(1, R2),
        "Wdt": Wdt.T, "bdt": bdt.reshape(1, L),
        # Conv1d weight flattened for the stacked-taps matmul:
        # (C_out, k*C_in), columns ordered (tap-major, C_in-minor).
        "w1d": jnp.transpose(conv1d_w, (0, 2, 1)).reshape(C, k * C),
        "b1d": conv1d_b.reshape(C, 1),
        "A_col": A_col.reshape(n, 1), "D": D,
    }


if __name__ == "__main__":
    # Module config: channels=4, width=4, height=4, hidden_size=8 -> L = 128
    B, C, W, H, Hid = 2, 4, 4, 4, 8
    rank, state_size, kernel_size = 4, 4, 3

    key = jax.random.PRNGKey(0)
    kx, kp = jax.random.split(key)
    x = 0.5 * jax.random.normal(kx, (B, C, W, H, Hid), jnp.float32)
    params = init_params(kp, C, W, H, Hid, rank, state_size, kernel_size)

    out = u_mamba_block_downscale(x, params, rank=rank, n=state_size, k=kernel_size)
    out = jax.block_until_ready(out)
    assert out.shape == (B, C, 2, 2, 4), out.shape
    assert bool(jnp.all(jnp.isfinite(out)))
    print("KERNEL_OK")
</pallas_src>

<mosaic_0001>
module attributes {stable_mosaic.version = 11 : i64} {
  func.func @kernel(%arg0: memref<2x128x128xbf16, #tpu.memory_space<vmem>>, %arg1: memref<4x128xbf16, #tpu.memory_space<vmem>>, %arg2: memref<4x1xf32, #tpu.memory_space<vmem>>, %arg3: memref<2x4x128xf32, #tpu.memory_space<vmem>>, %arg4: memref<2x4x128xf32, #tpu.memory_space<vmem>>, %arg5: memref<2x4x128xf32, #tpu.memory_space<vmem>>) attributes {dimension_semantics = [], scalar_prefetch = 0 : i64, scratch_operands = 0 : i64, tpu.core_type = #tpu.core_type<tc>} {
    %c0 = arith.constant 0 : index
    %c0_0 = arith.constant 0 : index
    %0 = vector.load %arg1[%c0, %c0_0] : memref<4x128xbf16, #tpu.memory_space<vmem>>, vector<4x128xbf16>
    %c0_1 = arith.constant 0 : index
    %c0_2 = arith.constant 0 : index
    %1 = vector.load %arg2[%c0_1, %c0_2] : memref<4x1xf32, #tpu.memory_space<vmem>>, vector<4x1xf32>
    %c0_3 = arith.constant 0 : index
    %c0_4 = arith.constant 0 : index
    %c0_5 = arith.constant 0 : index
    %2 = vector.load %arg0[%c0_3, %c0_4, %c0_5] : memref<2x128x128xbf16, #tpu.memory_space<vmem>>, vector<1x128x128xbf16>
    %3 = vector.shape_cast %2 : vector<1x128x128xbf16> to vector<128x128xbf16>
    %cst = arith.constant dense<0.000000e+00> : vector<4x128xf32>
    %4 = tpu.matmul %0, %3, %cst {dimension_numbers = #tpu.dot_dimension_numbers<[1], [0], [0], [1], [0, 0, 1, 1], [], []>} : vector<4x128xbf16>, vector<128x128xbf16>, vector<4x128xf32> -> vector<4x128xf32>
    %5 = vector.broadcast %1 : vector<4x1xf32> to vector<4x128xf32>
    %6 = arith.addf %4, %5 : vector<4x128xf32>
    %cst_6 = arith.constant 0.000000e+00 : f32
    %7 = vector.broadcast %cst_6 : f32 to vector<4x128xf32>
    %8 = arith.cmpf oge, %6, %7 : vector<4x128xf32>
    %cst_7 = arith.constant 0.00999999977 : f32
    %9 = vector.broadcast %cst_7 : f32 to vector<4x128xf32>
    %10 = arith.mulf %9, %6 : vector<4x128xf32>
    %11 = arith.select %8, %6, %10 : vector<4x128xi1>, vector<4x128xf32>
    %12 = arith.addf %6, %11 : vector<4x128xf32>
    %c0_8 = arith.constant 0 : index
    %c0_9 = arith.constant 0 : index
    %c0_10 = arith.constant 0 : index
    %13 = vector.load %arg4[%c0_8, %c0_9, %c0_10] : memref<2x4x128xf32, #tpu.memory_space<vmem>>, vector<1x4x128xf32>
    %14 = vector.shape_cast %13 : vector<1x4x128xf32> to vector<4x128xf32>
    %15 = vector.shape_cast %12 : vector<4x128xf32> to vector<1x4x128xf32>
    tpu.vector_store %arg4[%c0_8, %c0_9, %c0_10], %15 {strides = array<i32>} : memref<2x4x128xf32, #tpu.memory_space<vmem>>, vector<1x4x128xf32>,
    %c0_11 = arith.constant 0 : index
    %c0_12 = arith.constant 0 : index
    %c0_13 = arith.constant 0 : index
    %16 = vector.load %arg3[%c0_11, %c0_12, %c0_13] : memref<2x4x128xf32, #tpu.memory_space<vmem>>, vector<1x4x128xf32>
    %17 = vector.shape_cast %16 : vector<1x4x128xf32> to vector<4x128xf32>
    %18 = arith.addf %12, %17 : vector<4x128xf32>
    %c0_14 = arith.constant 0 : index
    %c0_15 = arith.constant 0 : index
    %c0_16 = arith.constant 0 : index
    %19 = vector.load %arg5[%c0_14, %c0_15, %c0_16] : memref<2x4x128xf32, #tpu.memory_space<vmem>>, vector<1x4x128xf32>
    %20 = vector.shape_cast %19 : vector<1x4x128xf32> to vector<4x128xf32>
    %21 = vector.shape_cast %18 : vector<4x128xf32> to vector<1x4x128xf32>
    tpu.vector_store %arg5[%c0_14, %c0_15, %c0_16], %21 {strides = array<i32>} : memref<2x4x128xf32, #tpu.memory_space<vmem>>, vector<1x4x128xf32>,
    %c1 = arith.constant 1 : index
    %c0_17 = arith.constant 0 : index
    %c0_18 = arith.constant 0 : index
    %22 = vector.load %arg0[%c1, %c0_17, %c0_18] : memref<2x128x128xbf16, #tpu.memory_space<vmem>>, vector<1x128x128xbf16>
    %23 = vector.shape_cast %22 : vector<1x128x128xbf16> to vector<128x128xbf16>
    %cst_19 = arith.constant dense<0.000000e+00> : vector<4x128xf32>
    %24 = tpu.matmul %0, %23, %cst_19 {dimension_numbers = #tpu.dot_dimension_numbers<[1], [0], [0], [1], [0, 0, 1, 1], [], []>} : vector<4x128xbf16>, vector<128x128xbf16>, vector<4x128xf32> -> vector<4x128xf32>
    %25 = vector.broadcast %1 : vector<4x1xf32> to vector<4x128xf32>
    %26 = arith.addf %24, %25 : vector<4x128xf32>
    %cst_20 = arith.constant 0.000000e+00 : f32
    %27 = vector.broadcast %cst_20 : f32 to vector<4x128xf32>
    %28 = arith.cmpf oge, %26, %27 : vector<4x128xf32>
    %cst_21 = arith.constant 0.00999999977 : f32
    %29 = vector.broadcast %cst_21 : f32 to vector<4x128xf32>
    %30 = arith.mulf %29, %26 : vector<4x128xf32>
    %31 = arith.select %28, %26, %30 : vector<4x128xi1>, vector<4x128xf32>
    %32 = arith.addf %26, %31 : vector<4x128xf32>
    %c1_22 = arith.constant 1 : index
    %c0_23 = arith.constant 0 : index
    %c0_24 = arith.constant 0 : index
    %33 = vector.load %arg4[%c1_22, %c0_23, %c0_24] : memref<2x4x128xf32, #tpu.memory_space<vmem>>, vector<1x4x128xf32>
    %34 = vector.shape_cast %33 : vector<1x4x128xf32> to vector<4x128xf32>
    %35 = vector.shape_cast %32 : vector<4x128xf32> to vector<1x4x128xf32>
    tpu.vector_store %arg4[%c1_22, %c0_23, %c0_24], %35 {strides = array<i32>} : memref<2x4x128xf32, #tpu.memory_space<vmem>>, vector<1x4x128xf32>,
    %c1_25 = arith.constant 1 : index
    %c0_26 = arith.constant 0 : index
    %c0_27 = arith.constant 0 : index
    %36 = vector.load %arg3[%c1_25, %c0_26, %c0_27] : memref<2x4x128xf32, #tpu.memory_space<vmem>>, vector<1x4x128xf32>
    %37 = vector.shape_cast %36 : vector<1x4x128xf32> to vector<4x128xf32>
    %38 = arith.addf %32, %37 : vector<4x128xf32>
    %c1_28 = arith.constant 1 : index
    %c0_29 = arith.constant 0 : index
    %c0_30 = arith.constant 0 : index
    %39 = vector.load %arg5[%c1_28, %c0_29, %c0_30] : memref<2x4x128xf32, #tpu.memory_space<vmem>>, vector<1x4x128xf32>
    %40 = vector.shape_cast %39 : vector<1x4x128xf32> to vector<4x128xf32>
    %41 = vector.shape_cast %38 : vector<4x128xf32> to vector<1x4x128xf32>
    tpu.vector_store %arg5[%c1_28, %c0_29, %c0_30], %41 {strides = array<i32>} : memref<2x4x128xf32, #tpu.memory_space<vmem>>, vector<1x4x128xf32>,
    return
  }
}

module attributes {stable_mosaic.version = 11 : i64} {
  func.func @kernel(%arg0: memref<2x128x128xbf16, #tpu.memory_space<vmem>>, %arg1: memref<4x128xbf16, #tpu.memory_space<vmem>>, %arg2: memref<4x1xf32, #tpu.memory_space<vmem>>, %arg3: memref<2x4x128xf32, #tpu.memory_space<vmem>>, %arg4: memref<2x4x128xf32, #tpu.memory_space<vmem>>, %arg5: memref<2x4x128xf32, #tpu.memory_space<vmem>>) attributes {dimension_semantics = [], scalar_prefetch = 0 : i64, scratch_operands = 0 : i64, tpu.core_type = #tpu.core_type<tc>} {
    %c0 = arith.constant 0 : index
    %c0_0 = arith.constant 0 : index
    %0 = vector.load %arg1[%c0, %c0_0] : memref<4x128xbf16, #tpu.memory_space<vmem>>, vector<4x128xbf16>
    %c0_1 = arith.constant 0 : index
    %c0_2 = arith.constant 0 : index
    %1 = vector.load %arg2[%c0_1, %c0_2] : memref<4x1xf32, #tpu.memory_space<vmem>>, vector<4x1xf32>
    %c0_3 = arith.constant 0 : index
    %c0_4 = arith.constant 0 : index
    %c0_5 = arith.constant 0 : index
    %2 = vector.load %arg0[%c0_3, %c0_4, %c0_5] : memref<2x128x128xbf16, #tpu.memory_space<vmem>>, vector<1x128x128xbf16>
    %3 = vector.shape_cast %2 : vector<1x128x128xbf16> to vector<128x128xbf16>
    %cst = arith.constant dense<0.000000e+00> : vector<4x128xf32>
    %4 = tpu.matmul %0, %3, %cst {dimension_numbers = #tpu.dot_dimension_numbers<[1], [0], [0], [1], [0, 0, 1, 1], [], []>} : vector<4x128xbf16>, vector<128x128xbf16>, vector<4x128xf32> -> vector<4x128xf32>
    %5 = vector.broadcast %1 : vector<4x1xf32> to vector<4x128xf32>
    %6 = arith.addf %4, %5 : vector<4x128xf32>
    %cst_6 = arith.constant 0.000000e+00 : f32
    %7 = vector.broadcast %cst_6 : f32 to vector<4x128xf32>
    %8 = arith.cmpf oge, %6, %7 : vector<4x128xf32>
    %cst_7 = arith.constant 0.00999999977 : f32
    %9 = vector.broadcast %cst_7 : f32 to vector<4x128xf32>
    %10 = arith.mulf %9, %6 : vector<4x128xf32>
    %11 = arith.select %8, %6, %10 : vector<4x128xi1>, vector<4x128xf32>
    %12 = arith.addf %6, %11 : vector<4x128xf32>
    %c0_8 = arith.constant 0 : index
    %c0_9 = arith.constant 0 : index
    %c0_10 = arith.constant 0 : index
    %13 = vector.load %arg4[%c0_8, %c0_9, %c0_10] : memref<2x4x128xf32, #tpu.memory_space<vmem>>, vector<1x4x128xf32>
    %14 = vector.shape_cast %13 : vector<1x4x128xf32> to vector<4x128xf32>
    %15 = vector.shape_cast %12 : vector<4x128xf32> to vector<1x4x128xf32>
    tpu.vector_store %arg4[%c0_8, %c0_9, %c0_10], %15 {strides = array<i32>} : memref<2x4x128xf32, #tpu.memory_space<vmem>>, vector<1x4x128xf32>,
    %c0_11 = arith.constant 0 : index
    %c0_12 = arith.constant 0 : index
    %c0_13 = arith.constant 0 : index
    %16 = vector.load %arg3[%c0_11, %c0_12, %c0_13] : memref<2x4x128xf32, #tpu.memory_space<vmem>>, vector<1x4x128xf32>
    %17 = vector.shape_cast %16 : vector<1x4x128xf32> to vector<4x128xf32>
    %18 = arith.addf %12, %17 : vector<4x128xf32>
    %c0_14 = arith.constant 0 : index
    %c0_15 = arith.constant 0 : index
    %c0_16 = arith.constant 0 : index
    %19 = vector.load %arg5[%c0_14, %c0_15, %c0_16] : memref<2x4x128xf32, #tpu.memory_space<vmem>>, vector<1x4x128xf32>
    %20 = vector.shape_cast %19 : vector<1x4x128xf32> to vector<4x128xf32>
    %21 = vector.shape_cast %18 : vector<4x128xf32> to vector<1x4x128xf32>
    tpu.vector_store %arg5[%c0_14, %c0_15, %c0_16], %21 {strides = array<i32>} : memref<2x4x128xf32, #tpu.memory_space<vmem>>, vector<1x4x128xf32>,
    %c1 = arith.constant 1 : index
    %c0_17 = arith.constant 0 : index
    %c0_18 = arith.constant 0 : index
    %22 = vector.load %arg0[%c1, %c0_17, %c0_18] : memref<2x128x128xbf16, #tpu.memory_space<vmem>>, vector<1x128x128xbf16>
    %23 = vector.shape_cast %22 : vector<1x128x128xbf16> to vector<128x128xbf16>
    %cst_19 = arith.constant dense<0.000000e+00> : vector<4x128xf32>
    %24 = tpu.matmul %0, %23, %cst_19 {dimension_numbers = #tpu.dot_dimension_numbers<[1], [0], [0], [1], [0, 0, 1, 1], [], []>} : vector<4x128xbf16>, vector<128x128xbf16>, vector<4x128xf32> -> vector<4x128xf32>
    %25 = vector.broadcast %1 : vector<4x1xf32> to vector<4x128xf32>
    %26 = arith.addf %24, %25 : vector<4x128xf32>
    %cst_20 = arith.constant 0.000000e+00 : f32
    %27 = vector.broadcast %cst_20 : f32 to vector<4x128xf32>
    %28 = arith.cmpf oge, %26, %27 : vector<4x128xf32>
    %cst_21 = arith.constant 0.00999999977 : f32
    %29 = vector.broadcast %cst_21 : f32 to vector<4x128xf32>
    %30 = arith.mulf %29, %26 : vector<4x128xf32>
    %31 = arith.select %28, %26, %30 : vector<4x128xi1>, vector<4x128xf32>
    %32 = arith.addf %26, %31 : vector<4x128xf32>
    %c1_22 = arith.constant 1 : index
    %c0_23 = arith.constant 0 : index
    %c0_24 = arith.constant 0 : index
    %33 = vector.load %arg4[%c1_22, %c0_23, %c0_24] : memref<2x4x128xf32, #tpu.memory_space<vmem>>, vector<1x4x128xf32>
    %34 = vector.shape_cast %33 : vector<1x4x128xf32> to vector<4x128xf32>
    %35 = vector.shape_cast %32 : vector<4x128xf32> to vector<1x4x128xf32>
    tpu.vector_store %arg4[%c1_22, %c0_23, %c0_24], %35 {strides = array<i32>} : memref<2x4x128xf32, #tpu.memory_space<vmem>>, vector<1x4x128xf32>,
    %c1_25 = arith.constant 1 : index
    %c0_26 = arith.constant 0 : index
    %c0_27 = arith.constant 0 : index
    %36 = vector.load %arg3[%c1_25, %c0_26, %c0_27] : memref<2x4x128xf32, #tpu.memory_space<vmem>>, vector<1x4x128xf32>
    %37 = vector.shape_cast %36 : vector<1x4x128xf32> to vector<4x128xf32>
    %38 = arith.addf %32, %37 : vector<4x128xf32>
    %c1_28 = arith.constant 1 : index
    %c0_29 = arith.constant 0 : index
    %c0_30 = arith.constant 0 : index
    %39 = vector.load %arg5[%c1_28, %c0_29, %c0_30] : memref<2x4x128xf32, #tpu.memory_space<vmem>>, vector<1x4x128xf32>
    %40 = vector.shape_cast %39 : vector<1x4x128xf32> to vector<4x128xf32>
    %41 = vector.shape_cast %38 : vector<4x128xf32> to vector<1x4x128xf32>
    tpu.vector_store %arg5[%c1_28, %c0_29, %c0_30], %41 {strides = array<i32>} : memref<2x4x128xf32, #tpu.memory_space<vmem>>, vector<1x4x128xf32>,
    return
  }
}

module attributes {stable_mosaic.version = 11 : i64} {
  func.func @kernel(%arg0: memref<8x128xf32, #tpu.memory_space<vmem>>, %arg1: memref<1x128xf32, #tpu.memory_space<vmem>>, %arg2: memref<1x128xf32, #tpu.memory_space<vmem>>, %arg3: memref<128x256xbf16, #tpu.memory_space<vmem>>, %arg4: memref<1x256xf32, #tpu.memory_space<vmem>>, %arg5: memref<4x12xf32, #tpu.memory_space<vmem>>, %arg6: memref<4x1xf32, #tpu.memory_space<vmem>>, %arg7: memref<128x12xbf16, #tpu.memory_space<vmem>>, %arg8: memref<1x12xf32, #tpu.memory_space<vmem>>, %arg9: memref<4x128xf32, #tpu.memory_space<vmem>>, %arg10: memref<1x128xf32, #tpu.memory_space<vmem>>, %arg11: memref<4x1xf32, #tpu.memory_space<vmem>>, %arg12: memref<1x128xf32, #tpu.memory_space<vmem>>, %arg13: memref<128x128xbf16, #tpu.memory_space<vmem>>, %arg14: memref<1x128xf32, #tpu.memory_space<vmem>>, %arg15: memref<8x128xf32, #tpu.memory_space<vmem>>, %arg16: memref<8x128xf32, #tpu.memory_space<vmem>>, %arg17: memref<8x128xf32, #tpu.memory_space<vmem>>) attributes {dimension_semantics = [], scalar_prefetch = 0 : i64, scratch_operands = 2 : i64, tpu.core_type = #tpu.core_type<tc>} {
    %c0 = arith.constant 0 : index
    %c0_0 = arith.constant 0 : index
    %0 = vector.load %arg0[%c0, %c0_0] : memref<8x128xf32, #tpu.memory_space<vmem>>, vector<8x128xf32>
    %cst = arith.constant dense<0.000000e+00> : vector<8xf32>
    %1 = vector.multi_reduction <add>, %0, %cst [1] : vector<8x128xf32> to vector<8xf32>
    %2 = vector.shape_cast %1 : vector<8xf32> to vector<8x1xf32>
    %cst_1 = arith.constant 1.280000e+02 : f32
    %3 = vector.broadcast %cst_1 : f32 to vector<8x1xf32>
    %4 = arith.divf %2, %3 : vector<8x1xf32>
    %5 = vector.broadcast %4 : vector<8x1xf32> to vector<8x128xf32>
    %6 = arith.subf %0, %5 : vector<8x128xf32>
    %7 = arith.mulf %6, %6 : vector<8x128xf32>
    %cst_2 = arith.constant dense<0.000000e+00> : vector<8xf32>
    %8 = vector.multi_reduction <add>, %7, %cst_2 [1] : vector<8x128xf32> to vector<8xf32>
    %9 = vector.shape_cast %8 : vector<8xf32> to vector<8x1xf32>
    %cst_3 = arith.constant 1.280000e+02 : f32
    %10 = vector.broadcast %cst_3 : f32 to vector<8x1xf32>
    %11 = arith.divf %9, %10 : vector<8x1xf32>
    %cst_4 = arith.constant 9.99999974E-6 : f32
    %12 = vector.broadcast %cst_4 : f32 to vector<8x1xf32>
    %13 = arith.addf %11, %12 : vector<8x1xf32>
    %14 = math.rsqrt %13 : vector<8x1xf32>
    %15 = vector.broadcast %14 : vector<8x1xf32> to vector<8x128xf32>
    %16 = arith.mulf %6, %15 : vector<8x128xf32>
    %c0_5 = arith.constant 0 : index
    %c0_6 = arith.constant 0 : index
    %17 = vector.load %arg1[%c0_5, %c0_6] : memref<1x128xf32, #tpu.memory_space<vmem>>, vector<1x128xf32>
    %18 = vector.broadcast %17 : vector<1x128xf32> to vector<8x128xf32>
    %19 = arith.mulf %16, %18 : vector<8x128xf32>
    %c0_7 = arith.constant 0 : index
    %c0_8 = arith.constant 0 : index
    %20 = vector.load %arg2[%c0_7, %c0_8] : memref<1x128xf32, #tpu.memory_space<vmem>>, vector<1x128xf32>
    %21 = vector.broadcast %20 : vector<1x128xf32> to vector<8x128xf32>
    %22 = arith.addf %19, %21 : vector<8x128xf32>
    %23 = arith.truncf %22 : vector<8x128xf32> to vector<8x128xbf16>
    %c0_9 = arith.constant 0 : index
    %c0_10 = arith.constant 0 : index
    %24 = vector.load %arg3[%c0_9, %c0_10] : memref<128x256xbf16, #tpu.memory_space<vmem>>, vector<128x256xbf16>
    %cst_11 = arith.constant dense<0.000000e+00> : vector<8x256xf32>
    %25 = tpu.matmul %23, %24, %cst_11 {dimension_numbers = #tpu.dot_dimension_numbers<[1], [0], [0], [1], [0, 0, 1, 1], [], []>} : vector<8x128xbf16>, vector<128x256xbf16>, vector<8x256xf32> -> vector<8x256xf32>
    %c0_12 = arith.constant 0 : index
    %c0_13 = arith.constant 0 : index
    %26 = vector.load %arg4[%c0_12, %c0_13] : memref<1x256xf32, #tpu.memory_space<vmem>>, vector<1x256xf32>
    %27 = vector.broadcast %26 : vector<1x256xf32> to vector<8x256xf32>
    %28 = arith.addf %25, %27 : vector<8x256xf32>
    %29 = vector.extract_strided_slice %28 {offsets = [0, 0], sizes = [8, 128], strides = [1, 1]} : vector<8x256xf32> to vector<8x128xf32>
    %30 = vector.extract_strided_slice %28 {offsets = [0, 128], sizes = [8, 128], strides = [1, 1]} : vector<8x256xf32> to vector<8x128xf32>
    %cst_14 = arith.constant 5.000000e-01 : f32
    %31 = vector.broadcast %cst_14 : f32 to vector<8x128xf32>
    %32 = arith.mulf %31, %30 : vector<8x128xf32>
    %33 = math.tanh %32 : vector<8x128xf32>
    %cst_15 = arith.constant 1.000000e+00 : f32
    %34 = vector.broadcast %cst_15 : f32 to vector<8x128xf32>
    %35 = arith.addf %33, %34 : vector<8x128xf32>
    %cst_16 = arith.constant 5.000000e-01 : f32
    %36 = vector.broadcast %cst_16 : f32 to vector<8x128xf32>
    %37 = arith.mulf %36, %35 : vector<8x128xf32>
    %38 = arith.mulf %30, %37 : vector<8x128xf32>
    %c0_17 = arith.constant 0 : index
    %c0_18 = arith.constant 0 : index
    %39 = vector.load %arg5[%c0_17, %c0_18] : memref<4x12xf32, #tpu.memory_space<vmem>>, vector<4x12xf32>
    %c0_19 = arith.constant 0 : index
    %c0_20 = arith.constant 0 : index
    %40 = vector.load %arg6[%c0_19, %c0_20] : memref<4x1xf32, #tpu.memory_space<vmem>>, vector<4x1xf32>
    %41 = vector.extract_strided_slice %29 {offsets = [0, 0], sizes = [4, 128], strides = [1, 1]} : vector<8x128xf32> to vector<4x128xf32>
    %cst_21 = arith.constant 0.000000e+00 : f32
    %42 = vector.broadcast %cst_21 : f32 to vector<4x1xf32>
    %43 = vector.extract_strided_slice %41 {offsets = [0, 0], sizes = [4, 127], strides = [1, 1]} : vector<4x128xf32> to vector<4x127xf32>
    %44 = tpu.concatenate %42, %43 in 1 : vector<4x1xf32>, vector<4x127xf32> -> vector<4x128xf32>
    %45 = vector.extract_strided_slice %41 {offsets = [0, 1], sizes = [4, 127], strides = [1, 1]} : vector<4x128xf32> to vector<4x127xf32>
    %cst_22 = arith.constant 0.000000e+00 : f32
    %46 = vector.broadcast %cst_22 : f32 to vector<4x1xf32>
    %47 = tpu.concatenate %45, %46 in 1 : vector<4x127xf32>, vector<4x1xf32> -> vector<4x128xf32>
    %48 = tpu.concatenate %44, %41, %47 in 0 : vector<4x128xf32>, vector<4x128xf32>, vector<4x128xf32> -> vector<12x128xf32>
    %cst_23 = arith.constant dense<0.000000e+00> : vector<4x128xf32>
    %49 = tpu.matmul %39, %48, %cst_23 {dimension_numbers = #tpu.dot_dimension_numbers<[1], [0], [0], [1], [0, 0, 1, 1], [], []>} : vector<4x12xf32>, vector<12x128xf32>, vector<4x128xf32> -> vector<4x128xf32>
    %50 = vector.broadcast %40 : vector<4x1xf32> to vector<4x128xf32>
    %51 = arith.addf %49, %50 : vector<4x128xf32>
    %c0_24 = arith.constant 0 : index
    %c0_25 = arith.constant 0 : index
    %52 = vector.load %arg16[%c0_24, %c0_25] : memref<8x128xf32, #tpu.memory_space<vmem>>, vector<4x128xf32>
    tpu.vector_store %arg16[%c0_24, %c0_25], %51 {strides = array<i32>} : memref<8x128xf32, #tpu.memory_space<vmem>>, vector<4x128xf32>,
    %53 = vector.extract_strided_slice %29 {offsets = [4, 0], sizes = [4, 128], strides = [1, 1]} : vector<8x128xf32> to vector<4x128xf32>
    %cst_26 = arith.constant 0.000000e+00 : f32
    %54 = vector.broadcast %cst_26 : f32 to vector<4x1xf32>
    %55 = vector.extract_strided_slice %53 {offsets = [0, 0], sizes = [4, 127], strides = [1, 1]} : vector<4x128xf32> to vector<4x127xf32>
    %56 = tpu.concatenate %54, %55 in 1 : vector<4x1xf32>, vector<4x127xf32> -> vector<4x128xf32>
    %57 = vector.extract_strided_slice %53 {offsets = [0, 1], sizes = [4, 127], strides = [1, 1]} : vector<4x128xf32> to vector<4x127xf32>
    %cst_27 = arith.constant 0.000000e+00 : f32
    %58 = vector.broadcast %cst_27 : f32 to vector<4x1xf32>
    %59 = tpu.concatenate %57, %58 in 1 : vector<4x127xf32>, vector<4x1xf32> -> vector<4x128xf32>
    %60 = tpu.concatenate %56, %53, %59 in 0 : vector<4x128xf32>, vector<4x128xf32>, vector<4x128xf32> -> vector<12x128xf32>
    %cst_28 = arith.constant dense<0.000000e+00> : vector<4x128xf32>
    %61 = tpu.matmul %39, %60, %cst_28 {dimension_numbers = #tpu.dot_dimension_numbers<[1], [0], [0], [1], [0, 0, 1, 1], [], []>} : vector<4x12xf32>, vector<12x128xf32>, vector<4x128xf32> -> vector<4x128xf32>
    %62 = vector.broadcast %40 : vector<4x1xf32> to vector<4x128xf32>
    %63 = arith.addf %61, %62 : vector<4x128xf32>
    %c4 = arith.constant 4 : index
    %c0_29 = arith.constant 0 : index
    %64 = vector.load %arg16[%c4, %c0_29] : memref<8x128xf32, #tpu.memory_space<vmem>>, vector<4x128xf32>
    tpu.vector_store %arg16[%c4, %c0_29], %63 {strides = array<i32>} : memref<8x128xf32, #tpu.memory_space<vmem>>, vector<4x128xf32>,
    %c0_30 = arith.constant 0 : index
    %c0_31 = arith.constant 0 : index
    %65 = vector.load %arg16[%c0_30, %c0_31] : memref<8x128xf32, #tpu.memory_space<vmem>>, vector<8x128xf32>
    %cst_32 = arith.constant 5.000000e-01 : f32
    %66 = vector.broadcast %cst_32 : f32 to vector<8x128xf32>
    %67 = arith.mulf %66, %65 : vector<8x128xf32>
    %68 = math.tanh %67 : vector<8x128xf32>
    %cst_33 = arith.constant 1.000000e+00 : f32
    %69 = vector.broadcast %cst_33 : f32 to vector<8x128xf32>
    %70 = arith.addf %68, %69 : vector<8x128xf32>
    %cst_34 = arith.constant 5.000000e-01 : f32
    %71 = vector.broadcast %cst_34 : f32 to vector<8x128xf32>
    %72 = arith.mulf %71, %70 : vector<8x128xf32>
    %73 = arith.mulf %65, %72 : vector<8x128xf32>
    %74 = arith.truncf %73 : vector<8x128xf32> to vector<8x128xbf16>
    %c0_35 = arith.constant 0 : index
    %c0_36 = arith.constant 0 : index
    %75 = vector.load %arg7[%c0_35, %c0_36] : memref<128x12xbf16, #tpu.memory_space<vmem>>, vector<128x12xbf16>
    %cst_37 = arith.constant dense<0.000000e+00> : vector<8x12xf32>
    %76 = tpu.matmul %74, %75, %cst_37 {dimension_numbers = #tpu.dot_dimension_numbers<[1], [0], [0], [1], [0, 0, 1, 1], [], []>} : vector<8x128xbf16>, vector<128x12xbf16>, vector<8x12xf32> -> vector<8x12xf32>
    %c0_38 = arith.constant 0 : index
    %c0_39 = arith.constant 0 : index
    %77 = vector.load %arg8[%c0_38, %c0_39] : memref<1x12xf32, #tpu.memory_space<vmem>>, vector<1x12xf32>
    %78 = vector.broadcast %77 : vector<1x12xf32> to vector<8x12xf32>
    %79 = arith.addf %76, %78 : vector<8x12xf32>
    %80 = vector.extract_strided_slice %79 {offsets = [0, 0], sizes = [8, 4], strides = [1, 1]} : vector<8x12xf32> to vector<8x4xf32>
    %81 = vector.extract_strided_slice %79 {offsets = [0, 4], sizes = [8, 4], strides = [1, 1]} : vector<8x12xf32> to vector<8x4xf32>
    %82 = vector.extract_strided_slice %79 {offsets = [0, 8], sizes = [8, 4], strides = [1, 1]} : vector<8x12xf32> to vector<8x4xf32>
    %c0_40 = arith.constant 0 : index
    %c0_41 = arith.constant 0 : index
    %83 = vector.load %arg9[%c0_40, %c0_41] : memref<4x128xf32, #tpu.memory_space<vmem>>, vector<4x128xf32>
    %cst_42 = arith.constant dense<0.000000e+00> : vector<8x128xf32>
    %84 = tpu.matmul %80, %83, %cst_42 {dimension_numbers = #tpu.dot_dimension_numbers<[1], [0], [0], [1], [0, 0, 1, 1], [], []>} : vector<8x4xf32>, vector<4x128xf32>, vector<8x128xf32> -> vector<8x128xf32>
    %c0_43 = arith.constant 0 : index
    %c0_44 = arith.constant 0 : index
    %85 = vector.load %arg10[%c0_43, %c0_44] : memref<1x128xf32, #tpu.memory_space<vmem>>, vector<1x128xf32>
    %86 = vector.broadcast %85 : vector<1x128xf32> to vector<8x128xf32>
    %87 = arith.addf %84, %86 : vector<8x128xf32>
    %cst_45 = arith.constant 0.000000e+00 : f32
    %88 = vector.broadcast %cst_45 : f32 to vector<8x128xf32>
    %89 = arith.maximumf %87, %88 : vector<8x128xf32>
    %90 = math.absf %87 : vector<8x128xf32>
    %cst_46 = arith.constant 0.000000e+00 : f32
    %91 = vector.broadcast %cst_46 : f32 to vector<8x128xf32>
    %92 = arith.subf %91, %90 : vector<8x128xf32>
    %93 = math.exp %92 : vector<8x128xf32>
    %cst_47 = arith.constant 1.000000e+00 : f32
    %94 = vector.broadcast %cst_47 : f32 to vector<8x128xf32>
    %95 = arith.addf %94, %93 : vector<8x128xf32>
    %96 = math.log %95 : vector<8x128xf32>
    %97 = arith.addf %89, %96 : vector<8x128xf32>
    %c0_48 = arith.constant 0 : index
    %c0_49 = arith.constant 0 : index
    %98 = vector.load %arg11[%c0_48, %c0_49] : memref<4x1xf32, #tpu.memory_space<vmem>>, vector<4x1xf32>
    %99 = vector.extract_strided_slice %97 {offsets = [0, 0], sizes = [4, 128], strides = [1, 1]} : vector<8x128xf32> to vector<4x128xf32>
    %100 = vector.extract_strided_slice %73 {offsets = [0, 0], sizes = [4, 128], strides = [1, 1]} : vector<8x128xf32> to vector<4x128xf32>
    %101 = vector.extract_strided_slice %81 {offsets = [0, 0], sizes = [4, 4], strides = [1, 1]} : vector<8x4xf32> to vector<4x4xf32>
    %102 = vector.extract_strided_slice %82 {offsets = [0, 0], sizes = [4, 4], strides = [1, 1]} : vector<8x4xf32> to vector<4x4xf32>
    %cst_50 = arith.constant 0.000000e+00 : f32
    %103 = vector.broadcast %cst_50 : f32 to vector<4x128xf32>
    %104 = vector.extract_strided_slice %99 {offsets = [0, 0], sizes = [1, 128], strides = [1, 1]} : vector<4x128xf32> to vector<1x128xf32>
    %105 = vector.broadcast %104 : vector<1x128xf32> to vector<4x128xf32>
    %106 = vector.broadcast %98 : vector<4x1xf32> to vector<4x128xf32>
    %107 = arith.mulf %105, %106 : vector<4x128xf32>
    %108 = math.exp %107 : vector<4x128xf32>
    %109 = vector.extract_strided_slice %101 {offsets = [0, 0], sizes = [1, 4], strides = [1, 1]} : vector<4x4xf32> to vector<1x4xf32>
    %110 = vector.shape_cast %109 : vector<1x4xf32> to vector<4xf32>
    %111 = vector.shape_cast %110 : vector<4xf32> to vector<4x1xf32>
    %112 = vector.broadcast %104 : vector<1x128xf32> to vector<4x128xf32>
    %113 = vector.broadcast %111 : vector<4x1xf32> to vector<4x128xf32>
    %114 = arith.mulf %112, %113 : vector<4x128xf32>
    %115 = vector.extract_strided_slice %100 {offsets = [0, 0], sizes = [1, 128], strides = [1, 1]} : vector<4x128xf32> to vector<1x128xf32>
    %116 = vector.broadcast %115 : vector<1x128xf32> to vector<4x128xf32>
    %117 = arith.mulf %114, %116 : vector<4x128xf32>
    %118 = arith.mulf %108, %103 : vector<4x128xf32>
    %119 = arith.addf %118, %117 : vector<4x128xf32>
    %120 = vector.extract_strided_slice %102 {offsets = [0, 0], sizes = [1, 4], strides = [1, 1]} : vector<4x4xf32> to vector<1x4xf32>
    %121 = vector.shape_cast %120 : vector<1x4xf32> to vector<4xf32>
    %122 = vector.shape_cast %121 : vector<4xf32> to vector<4x1xf32>
    %123 = vector.broadcast %122 : vector<4x1xf32> to vector<4x128xf32>
    %124 = arith.mulf %119, %123 : vector<4x128xf32>
    %cst_51 = arith.constant dense<0.000000e+00> : vector<128xf32>
    %125 = vector.multi_reduction <add>, %124, %cst_51 [0] : vector<4x128xf32> to vector<128xf32>
    %126 = vector.shape_cast %125 : vector<128xf32> to vector<1x128xf32>
    %c0_52 = arith.constant 0 : index
    %c0_53 = arith.constant 0 : index
    %127 = vector.load %arg17[%c0_52, %c0_53] : memref<8x128xf32, #tpu.memory_space<vmem>>, vector<1x128xf32>
    tpu.vector_store %arg17[%c0_52, %c0_53], %126 {strides = array<i32>} : memref<8x128xf32, #tpu.memory_space<vmem>>, vector<1x128xf32>,
    %128 = vector.extract_strided_slice %99 {offsets = [1, 0], sizes = [1, 128], strides = [1, 1]} : vector<4x128xf32> to vector<1x128xf32>
    %129 = vector.broadcast %128 : vector<1x128xf32> to vector<4x128xf32>
    %130 = vector.broadcast %98 : vector<4x1xf32> to vector<4x128xf32>
    %131 = arith.mulf %129, %130 : vector<4x128xf32>
    %132 = math.exp %131 : vector<4x128xf32>
    %133 = vector.extract_strided_slice %101 {offsets = [1, 0], sizes = [1, 4], strides = [1, 1]} : vector<4x4xf32> to vector<1x4xf32>
    %134 = vector.shape_cast %133 : vector<1x4xf32> to vector<4xf32>
    %135 = vector.shape_cast %134 : vector<4xf32> to vector<4x1xf32>
    %136 = vector.broadcast %128 : vector<1x128xf32> to vector<4x128xf32>
    %137 = vector.broadcast %135 : vector<4x1xf32> to vector<4x128xf32>
    %138 = arith.mulf %136, %137 : vector<4x128xf32>
    %139 = vector.extract_strided_slice %100 {offsets = [1, 0], sizes = [1, 128], strides = [1, 1]} : vector<4x128xf32> to vector<1x128xf32>
    %140 = vector.broadcast %139 : vector<1x128xf32> to vector<4x128xf32>
    %141 = arith.mulf %138, %140 : vector<4x128xf32>
    %142 = arith.mulf %132, %119 : vector<4x128xf32>
    %143 = arith.addf %142, %141 : vector<4x128xf32>
    %144 = vector.extract_strided_slice %102 {offsets = [1, 0], sizes = [1, 4], strides = [1, 1]} : vector<4x4xf32> to vector<1x4xf32>
    %145 = vector.shape_cast %144 : vector<1x4xf32> to vector<4xf32>
    %146 = vector.shape_cast %145 : vector<4xf32> to vector<4x1xf32>
    %147 = vector.broadcast %146 : vector<4x1xf32> to vector<4x128xf32>
    %148 = arith.mulf %143, %147 : vector<4x128xf32>
    %cst_54 = arith.constant dense<0.000000e+00> : vector<128xf32>
    %149 = vector.multi_reduction <add>, %148, %cst_54 [0] : vector<4x128xf32> to vector<128xf32>
    %150 = vector.shape_cast %149 : vector<128xf32> to vector<1x128xf32>
    %c1 = arith.constant 1 : index
    %c0_55 = arith.constant 0 : index
    %151 = vector.load %arg17[%c1, %c0_55] : memref<8x128xf32, #tpu.memory_space<vmem>>, vector<1x128xf32>
    tpu.vector_store %arg17[%c1, %c0_55], %150 {strides = array<i32>} : memref<8x128xf32, #tpu.memory_space<vmem>>, vector<1x128xf32>,
    %152 = vector.extract_strided_slice %99 {offsets = [2, 0], sizes = [1, 128], strides = [1, 1]} : vector<4x128xf32> to vector<1x128xf32>
    %153 = vector.broadcast %152 : vector<1x128xf32> to vector<4x128xf32>
    %154 = vector.broadcast %98 : vector<4x1xf32> to vector<4x128xf32>
    %155 = arith.mulf %153, %154 : vector<4x128xf32>
    %156 = math.exp %155 : vector<4x128xf32>
    %157 = vector.extract_strided_slice %101 {offsets = [2, 0], sizes = [1, 4], strides = [1, 1]} : vector<4x4xf32> to vector<1x4xf32>
    %158 = vector.shape_cast %157 : vector<1x4xf32> to vector<4xf32>
    %159 = vector.shape_cast %158 : vector<4xf32> to vector<4x1xf32>
    %160 = vector.broadcast %152 : vector<1x128xf32> to vector<4x128xf32>
    %161 = vector.broadcast %159 : vector<4x1xf32> to vector<4x128xf32>
    %162 = arith.mulf %160, %161 : vector<4x128xf32>
    %163 = vector.extract_strided_slice %100 {offsets = [2, 0], sizes = [1, 128], strides = [1, 1]} : vector<4x128xf32> to vector<1x128xf32>
    %164 = vector.broadcast %163 : vector<1x128xf32> to vector<4x128xf32>
    %165 = arith.mulf %162, %164 : vector<4x128xf32>
    %166 = arith.mulf %156, %143 : vector<4x128xf32>
    %167 = arith.addf %166, %165 : vector<4x128xf32>
    %168 = vector.extract_strided_slice %102 {offsets = [2, 0], sizes = [1, 4], strides = [1, 1]} : vector<4x4xf32> to vector<1x4xf32>
    %169 = vector.shape_cast %168 : vector<1x4xf32> to vector<4xf32>
    %170 = vector.shape_cast %169 : vector<4xf32> to vector<4x1xf32>
    %171 = vector.broadcast %170 : vector<4x1xf32> to vector<4x128xf32>
    %172 = arith.mulf %167, %171 : vector<4x128xf32>
    %cst_56 = arith.constant dense<0.000000e+00> : vector<128xf32>
    %173 = vector.multi_reduction <add>, %172, %cst_56 [0] : vector<4x128xf32> to vector<128xf32>
    %174 = vector.shape_cast %173 : vector<128xf32> to vector<1x128xf32>
    %c2 = arith.constant 2 : index
    %c0_57 = arith.constant 0 : index
    %175 = vector.load %arg17[%c2, %c0_57] : memref<8x128xf32, #tpu.memory_space<vmem>>, vector<1x128xf32>
    tpu.vector_store %arg17[%c2, %c0_57], %174 {strides = array<i32>} : memref<8x128xf32, #tpu.memory_space<vmem>>, vector<1x128xf32>,
    %176 = vector.extract_strided_slice %99 {offsets = [3, 0], sizes = [1, 128], strides = [1, 1]} : vector<4x128xf32> to vector<1x128xf32>
    %177 = vector.broadcast %176 : vector<1x128xf32> to vector<4x128xf32>
    %178 = vector.broadcast %98 : vector<4x1xf32> to vector<4x128xf32>
    %179 = arith.mulf %177, %178 : vector<4x128xf32>
    %180 = math.exp %179 : vector<4x128xf32>
    %181 = vector.extract_strided_slice %101 {offsets = [3, 0], sizes = [1, 4], strides = [1, 1]} : vector<4x4xf32> to vector<1x4xf32>
    %182 = vector.shape_cast %181 : vector<1x4xf32> to vector<4xf32>
    %183 = vector.shape_cast %182 : vector<4xf32> to vector<4x1xf32>
    %184 = vector.broadcast %176 : vector<1x128xf32> to vector<4x128xf32>
    %185 = vector.broadcast %183 : vector<4x1xf32> to vector<4x128xf32>
    %186 = arith.mulf %184, %185 : vector<4x128xf32>
    %187 = vector.extract_strided_slice %100 {offsets = [3, 0], sizes = [1, 128], strides = [1, 1]} : vector<4x128xf32> to vector<1x128xf32>
    %188 = vector.broadcast %187 : vector<1x128xf32> to vector<4x128xf32>
    %189 = arith.mulf %186, %188 : vector<4x128xf32>
    %190 = arith.mulf %180, %167 : vector<4x128xf32>
    %191 = arith.addf %190, %189 : vector<4x128xf32>
    %192 = vector.extract_strided_slice %102 {offsets = [3, 0], sizes = [1, 4], strides = [1, 1]} : vector<4x4xf32> to vector<1x4xf32>
    %193 = vector.shape_cast %192 : vector<1x4xf32> to vector<4xf32>
    %194 = vector.shape_cast %193 : vector<4xf32> to vector<4x1xf32>
    %195 = vector.broadcast %194 : vector<4x1xf32> to vector<4x128xf32>
    %196 = arith.mulf %191, %195 : vector<4x128xf32>
    %cst_58 = arith.constant dense<0.000000e+00> : vector<128xf32>
    %197 = vector.multi_reduction <add>, %196, %cst_58 [0] : vector<4x128xf32> to vector<128xf32>
    %198 = vector.shape_cast %197 : vector<128xf32> to vector<1x128xf32>
    %c3 = arith.constant 3 : index
    %c0_59 = arith.constant 0 : index
    %199 = vector.load %arg17[%c3, %c0_59] : memref<8x128xf32, #tpu.memory_space<vmem>>, vector<1x128xf32>
    tpu.vector_store %arg17[%c3, %c0_59], %198 {strides = array<i32>} : memref<8x128xf32, #tpu.memory_space<vmem>>, vector<1x128xf32>,
    %200 = vector.extract_strided_slice %97 {offsets = [4, 0], sizes = [4, 128], strides = [1, 1]} : vector<8x128xf32> to vector<4x128xf32>
    %201 = vector.extract_strided_slice %73 {offsets = [4, 0], sizes = [4, 128], strides = [1, 1]} : vector<8x128xf32> to vector<4x128xf32>
    %202 = vector.extract_strided_slice %81 {offsets = [4, 0], sizes = [4, 4], strides = [1, 1]} : vector<8x4xf32> to vector<4x4xf32>
    %203 = vector.extract_strided_slice %82 {offsets = [4, 0], sizes = [4, 4], strides = [1, 1]} : vector<8x4xf32> to vector<4x4xf32>
    %cst_60 = arith.constant 0.000000e+00 : f32
    %204 = vector.broadcast %cst_60 : f32 to vector<4x128xf32>
    %205 = vector.extract_strided_slice %200 {offsets = [0, 0], sizes = [1, 128], strides = [1, 1]} : vector<4x128xf32> to vector<1x128xf32>
    %206 = vector.broadcast %205 : vector<1x128xf32> to vector<4x128xf32>
    %207 = vector.broadcast %98 : vector<4x1xf32> to vector<4x128xf32>
    %208 = arith.mulf %206, %207 : vector<4x128xf32>
    %209 = math.exp %208 : vector<4x128xf32>
    %210 = vector.extract_strided_slice %202 {offsets = [0, 0], sizes = [1, 4], strides = [1, 1]} : vector<4x4xf32> to vector<1x4xf32>
    %211 = vector.shape_cast %210 : vector<1x4xf32> to vector<4xf32>
    %212 = vector.shape_cast %211 : vector<4xf32> to vector<4x1xf32>
    %213 = vector.broadcast %205 : vector<1x128xf32> to vector<4x128xf32>
    %214 = vector.broadcast %212 : vector<4x1xf32> to vector<4x128xf32>
    %215 = arith.mulf %213, %214 : vector<4x128xf32>
    %216 = vector.extract_strided_slice %201 {offsets = [0, 0], sizes = [1, 128], strides = [1, 1]} : vector<4x128xf32> to vector<1x128xf32>
    %217 = vector.broadcast %216 : vector<1x128xf32> to vector<4x128xf32>
    %218 = arith.mulf %215, %217 : vector<4x128xf32>
    %219 = arith.mulf %209, %204 : vector<4x128xf32>
    %220 = arith.addf %219, %218 : vector<4x128xf32>
    %221 = vector.extract_strided_slice %203 {offsets = [0, 0], sizes = [1, 4], strides = [1, 1]} : vector<4x4xf32> to vector<1x4xf32>
    %222 = vector.shape_cast %221 : vector<1x4xf32> to vector<4xf32>
    %223 = vector.shape_cast %222 : vector<4xf32> to vector<4x1xf32>
    %224 = vector.broadcast %223 : vector<4x1xf32> to vector<4x128xf32>
    %225 = arith.mulf %220, %224 : vector<4x128xf32>
    %cst_61 = arith.constant dense<0.000000e+00> : vector<128xf32>
    %226 = vector.multi_reduction <add>, %225, %cst_61 [0] : vector<4x128xf32> to vector<128xf32>
    %227 = vector.shape_cast %226 : vector<128xf32> to vector<1x128xf32>
    %c4_62 = arith.constant 4 : index
    %c0_63 = arith.constant 0 : index
    %228 = vector.load %arg17[%c4_62, %c0_63] : memref<8x128xf32, #tpu.memory_space<vmem>>, vector<1x128xf32>
    tpu.vector_store %arg17[%c4_62, %c0_63], %227 {strides = array<i32>} : memref<8x128xf32, #tpu.memory_space<vmem>>, vector<1x128xf32>,
    %229 = vector.extract_strided_slice %200 {offsets = [1, 0], sizes = [1, 128], strides = [1, 1]} : vector<4x128xf32> to vector<1x128xf32>
    %230 = vector.broadcast %229 : vector<1x128xf32> to vector<4x128xf32>
    %231 = vector.broadcast %98 : vector<4x1xf32> to vector<4x128xf32>
    %232 = arith.mulf %230, %231 : vector<4x128xf32>
    %233 = math.exp %232 : vector<4x128xf32>
    %234 = vector.extract_strided_slice %202 {offsets = [1, 0], sizes = [1, 4], strides = [1, 1]} : vector<4x4xf32> to vector<1x4xf32>
    %235 = vector.shape_cast %234 : vector<1x4xf32> to vector<4xf32>
    %236 = vector.shape_cast %235 : vector<4xf32> to vector<4x1xf32>
    %237 = vector.broadcast %229 : vector<1x128xf32> to vector<4x128xf32>
    %238 = vector.broadcast %236 : vector<4x1xf32> to vector<4x128xf32>
    %239 = arith.mulf %237, %238 : vector<4x128xf32>
    %240 = vector.extract_strided_slice %201 {offsets = [1, 0], sizes = [1, 128], strides = [1, 1]} : vector<4x128xf32> to vector<1x128xf32>
    %241 = vector.broadcast %240 : vector<1x128xf32> to vector<4x128xf32>
    %242 = arith.mulf %239, %241 : vector<4x128xf32>
    %243 = arith.mulf %233, %220 : vector<4x128xf32>
    %244 = arith.addf %243, %242 : vector<4x128xf32>
    %245 = vector.extract_strided_slice %203 {offsets = [1, 0], sizes = [1, 4], strides = [1, 1]} : vector<4x4xf32> to vector<1x4xf32>
    %246 = vector.shape_cast %245 : vector<1x4xf32> to vector<4xf32>
    %247 = vector.shape_cast %246 : vector<4xf32> to vector<4x1xf32>
    %248 = vector.broadcast %247 : vector<4x1xf32> to vector<4x128xf32>
    %249 = arith.mulf %244, %248 : vector<4x128xf32>
    %cst_64 = arith.constant dense<0.000000e+00> : vector<128xf32>
    %250 = vector.multi_reduction <add>, %249, %cst_64 [0] : vector<4x128xf32> to vector<128xf32>
    %251 = vector.shape_cast %250 : vector<128xf32> to vector<1x128xf32>
    %c5 = arith.constant 5 : index
    %c0_65 = arith.constant 0 : index
    %252 = vector.load %arg17[%c5, %c0_65] : memref<8x128xf32, #tpu.memory_space<vmem>>, vector<1x128xf32>
    tpu.vector_store %arg17[%c5, %c0_65], %251 {strides = array<i32>} : memref<8x128xf32, #tpu.memory_space<vmem>>, vector<1x128xf32>,
    %253 = vector.extract_strided_slice %200 {offsets = [2, 0], sizes = [1, 128], strides = [1, 1]} : vector<4x128xf32> to vector<1x128xf32>
    %254 = vector.broadcast %253 : vector<1x128xf32> to vector<4x128xf32>
    %255 = vector.broadcast %98 : vector<4x1xf32> to vector<4x128xf32>
    %256 = arith.mulf %254, %255 : vector<4x128xf32>
    %257 = math.exp %256 : vector<4x128xf32>
    %258 = vector.extract_strided_slice %202 {offsets = [2, 0], sizes = [1, 4], strides = [1, 1]} : vector<4x4xf32> to vector<1x4xf32>
    %259 = vector.shape_cast %258 : vector<1x4xf32> to vector<4xf32>
    %260 = vector.shape_cast %259 : vector<4xf32> to vector<4x1xf32>
    %261 = vector.broadcast %253 : vector<1x128xf32> to vector<4x128xf32>
    %262 = vector.broadcast %260 : vector<4x1xf32> to vector<4x128xf32>
    %263 = arith.mulf %261, %262 : vector<4x128xf32>
    %264 = vector.extract_strided_slice %201 {offsets = [2, 0], sizes = [1, 128], strides = [1, 1]} : vector<4x128xf32> to vector<1x128xf32>
    %265 = vector.broadcast %264 : vector<1x128xf32> to vector<4x128xf32>
    %266 = arith.mulf %263, %265 : vector<4x128xf32>
    %267 = arith.mulf %257, %244 : vector<4x128xf32>
    %268 = arith.addf %267, %266 : vector<4x128xf32>
    %269 = vector.extract_strided_slice %203 {offsets = [2, 0], sizes = [1, 4], strides = [1, 1]} : vector<4x4xf32> to vector<1x4xf32>
    %270 = vector.shape_cast %269 : vector<1x4xf32> to vector<4xf32>
    %271 = vector.shape_cast %270 : vector<4xf32> to vector<4x1xf32>
    %272 = vector.broadcast %271 : vector<4x1xf32> to vector<4x128xf32>
    %273 = arith.mulf %268, %272 : vector<4x128xf32>
    %cst_66 = arith.constant dense<0.000000e+00> : vector<128xf32>
    %274 = vector.multi_reduction <add>, %273, %cst_66 [0] : vector<4x128xf32> to vector<128xf32>
    %275 = vector.shape_cast %274 : vector<128xf32> to vector<1x128xf32>
    %c6 = arith.constant 6 : index
    %c0_67 = arith.constant 0 : index
    %276 = vector.load %arg17[%c6, %c0_67] : memref<8x128xf32, #tpu.memory_space<vmem>>, vector<1x128xf32>
    tpu.vector_store %arg17[%c6, %c0_67], %275 {strides = array<i32>} : memref<8x128xf32, #tpu.memory_space<vmem>>, vector<1x128xf32>,
    %277 = vector.extract_strided_slice %200 {offsets = [3, 0], sizes = [1, 128], strides = [1, 1]} : vector<4x128xf32> to vector<1x128xf32>
    %278 = vector.broadcast %277 : vector<1x128xf32> to vector<4x128xf32>
    %279 = vector.broadcast %98 : vector<4x1xf32> to vector<4x128xf32>
    %280 = arith.mulf %278, %279 : vector<4x128xf32>
    %281 = math.exp %280 : vector<4x128xf32>
    %282 = vector.extract_strided_slice %202 {offsets = [3, 0], sizes = [1, 4], strides = [1, 1]} : vector<4x4xf32> to vector<1x4xf32>
    %283 = vector.shape_cast %282 : vector<1x4xf32> to vector<4xf32>
    %284 = vector.shape_cast %283 : vector<4xf32> to vector<4x1xf32>
    %285 = vector.broadcast %277 : vector<1x128xf32> to vector<4x128xf32>
    %286 = vector.broadcast %284 : vector<4x1xf32> to vector<4x128xf32>
    %287 = arith.mulf %285, %286 : vector<4x128xf32>
    %288 = vector.extract_strided_slice %201 {offsets = [3, 0], sizes = [1, 128], strides = [1, 1]} : vector<4x128xf32> to vector<1x128xf32>
    %289 = vector.broadcast %288 : vector<1x128xf32> to vector<4x128xf32>
    %290 = arith.mulf %287, %289 : vector<4x128xf32>
    %291 = arith.mulf %281, %268 : vector<4x128xf32>
    %292 = arith.addf %291, %290 : vector<4x128xf32>
    %293 = vector.extract_strided_slice %203 {offsets = [3, 0], sizes = [1, 4], strides = [1, 1]} : vector<4x4xf32> to vector<1x4xf32>
    %294 = vector.shape_cast %293 : vector<1x4xf32> to vector<4xf32>
    %295 = vector.shape_cast %294 : vector<4xf32> to vector<4x1xf32>
    %296 = vector.broadcast %295 : vector<4x1xf32> to vector<4x128xf32>
    %297 = arith.mulf %292, %296 : vector<4x128xf32>
    %cst_68 = arith.constant dense<0.000000e+00> : vector<128xf32>
    %298 = vector.multi_reduction <add>, %297, %cst_68 [0] : vector<4x128xf32> to vector<128xf32>
    %299 = vector.shape_cast %298 : vector<128xf32> to vector<1x128xf32>
    %c7 = arith.constant 7 : index
    %c0_69 = arith.constant 0 : index
    %300 = vector.load %arg17[%c7, %c0_69] : memref<8x128xf32, #tpu.memory_space<vmem>>, vector<1x128xf32>
    tpu.vector_store %arg17[%c7, %c0_69], %299 {strides = array<i32>} : memref<8x128xf32, #tpu.memory_space<vmem>>, vector<1x128xf32>,
    %c0_70 = arith.constant 0 : index
    %c0_71 = arith.constant 0 : index
    %301 = vector.load %arg17[%c0_70, %c0_71] : memref<8x128xf32, #tpu.memory_space<vmem>>, vector<8x128xf32>
    %c0_72 = arith.constant 0 : index
    %c0_73 = arith.constant 0 : index
    %302 = vector.load %arg12[%c0_72, %c0_73] : memref<1x128xf32, #tpu.memory_space<vmem>>, vector<1x128xf32>
    %303 = vector.broadcast %302 : vector<1x128xf32> to vector<8x128xf32>
    %304 = arith.mulf %73, %303 : vector<8x128xf32>
    %305 = arith.addf %301, %304 : vector<8x128xf32>
    %306 = arith.mulf %305, %38 : vector<8x128xf32>
    %307 = arith.truncf %306 : vector<8x128xf32> to vector<8x128xbf16>
    %c0_74 = arith.constant 0 : index
    %c0_75 = arith.constant 0 : index
    %308 = vector.load %arg13[%c0_74, %c0_75] : memref<128x128xbf16, #tpu.memory_space<vmem>>, vector<128x128xbf16>
    %cst_76 = arith.constant dense<0.000000e+00> : vector<8x128xf32>
    %309 = tpu.matmul %307, %308, %cst_76 {dimension_numbers = #tpu.dot_dimension_numbers<[1], [0], [0], [1], [0, 0, 1, 1], [], []>} : vector<8x128xbf16>, vector<128x128xbf16>, vector<8x128xf32> -> vector<8x128xf32>
    %c0_77 = arith.constant 0 : index
    %c0_78 = arith.constant 0 : index
    %310 = vector.load %arg14[%c0_77, %c0_78] : memref<1x128xf32, #tpu.memory_space<vmem>>, vector<1x128xf32>
    %311 = vector.broadcast %310 : vector<1x128xf32> to vector<8x128xf32>
    %312 = arith.addf %309, %311 : vector<8x128xf32>
    %c0_79 = arith.constant 0 : index
    %c0_80 = arith.constant 0 : index
    %313 = vector.load %arg15[%c0_79, %c0_80] : memref<8x128xf32, #tpu.memory_space<vmem>>, vector<8x128xf32>
    tpu.vector_store %arg15[%c0_79, %c0_80], %312 {strides = array<i32>} : memref<8x128xf32, #tpu.memory_space<vmem>>, vector<8x128xf32>,
    return
  }
}

module attributes {stable_mosaic.version = 11 : i64} {
  func.func @kernel(%arg0: memref<2x128x16xbf16, #tpu.memory_space<vmem>>, %arg1: memref<4x128xbf16, #tpu.memory_space<vmem>>, %arg2: memref<4x1xf32, #tpu.memory_space<vmem>>, %arg3: memref<2x4x16xf32, #tpu.memory_space<vmem>>) attributes {dimension_semantics = [], scalar_prefetch = 0 : i64, scratch_operands = 0 : i64, tpu.core_type = #tpu.core_type<tc>} {
    %c0 = arith.constant 0 : index
    %c0_0 = arith.constant 0 : index
    %0 = vector.load %arg1[%c0, %c0_0] : memref<4x128xbf16, #tpu.memory_space<vmem>>, vector<4x128xbf16>
    %c0_1 = arith.constant 0 : index
    %c0_2 = arith.constant 0 : index
    %1 = vector.load %arg2[%c0_1, %c0_2] : memref<4x1xf32, #tpu.memory_space<vmem>>, vector<4x1xf32>
    %c0_3 = arith.constant 0 : index
    %c0_4 = arith.constant 0 : index
    %c0_5 = arith.constant 0 : index
    %2 = vector.load %arg0[%c0_3, %c0_4, %c0_5] : memref<2x128x16xbf16, #tpu.memory_space<vmem>>, vector<1x128x16xbf16>
    %3 = vector.shape_cast %2 : vector<1x128x16xbf16> to vector<128x16xbf16>
    %cst = arith.constant dense<0.000000e+00> : vector<4x16xf32>
    %4 = tpu.matmul %0, %3, %cst {dimension_numbers = #tpu.dot_dimension_numbers<[1], [0], [0], [1], [0, 0, 1, 1], [], []>} : vector<4x128xbf16>, vector<128x16xbf16>, vector<4x16xf32> -> vector<4x16xf32>
    %5 = vector.broadcast %1 : vector<4x1xf32> to vector<4x16xf32>
    %6 = arith.addf %4, %5 : vector<4x16xf32>
    %c0_6 = arith.constant 0 : index
    %c0_7 = arith.constant 0 : index
    %c0_8 = arith.constant 0 : index
    %7 = vector.load %arg3[%c0_6, %c0_7, %c0_8] : memref<2x4x16xf32, #tpu.memory_space<vmem>>, vector<1x4x16xf32>
    %8 = vector.shape_cast %7 : vector<1x4x16xf32> to vector<4x16xf32>
    %9 = vector.shape_cast %6 : vector<4x16xf32> to vector<1x4x16xf32>
    tpu.vector_store %arg3[%c0_6, %c0_7, %c0_8], %9 {strides = array<i32>} : memref<2x4x16xf32, #tpu.memory_space<vmem>>, vector<1x4x16xf32>,
    %c1 = arith.constant 1 : index
    %c0_9 = arith.constant 0 : index
    %c0_10 = arith.constant 0 : index
    %10 = vector.load %arg0[%c1, %c0_9, %c0_10] : memref<2x128x16xbf16, #tpu.memory_space<vmem>>, vector<1x128x16xbf16>
    %11 = vector.shape_cast %10 : vector<1x128x16xbf16> to vector<128x16xbf16>
    %cst_11 = arith.constant dense<0.000000e+00> : vector<4x16xf32>
    %12 = tpu.matmul %0, %11, %cst_11 {dimension_numbers = #tpu.dot_dimension_numbers<[1], [0], [0], [1], [0, 0, 1, 1], [], []>} : vector<4x128xbf16>, vector<128x16xbf16>, vector<4x16xf32> -> vector<4x16xf32>
    %13 = vector.broadcast %1 : vector<4x1xf32> to vector<4x16xf32>
    %14 = arith.addf %12, %13 : vector<4x16xf32>
    %c1_12 = arith.constant 1 : index
    %c0_13 = arith.constant 0 : index
    %c0_14 = arith.constant 0 : index
    %15 = vector.load %arg3[%c1_12, %c0_13, %c0_14] : memref<2x4x16xf32, #tpu.memory_space<vmem>>, vector<1x4x16xf32>
    %16 = vector.shape_cast %15 : vector<1x4x16xf32> to vector<4x16xf32>
    %17 = vector.shape_cast %14 : vector<4x16xf32> to vector<1x4x16xf32>
    tpu.vector_store %arg3[%c1_12, %c0_13, %c0_14], %17 {strides = array<i32>} : memref<2x4x16xf32, #tpu.memory_space<vmem>>, vector<1x4x16xf32>,
    return
  }
}

</mosaic_0001>

<bundles_post_ra>
// kernel: u_mamba_block_downscale.5
= control target key start
LH: loop header
LB: loop body
LE: loop exit
PB: predicated region body
PF: predicated region fallthrough
CT: control target
= control target key end

     0   :  { %v415_v1 = vmov 0.0   ;;  %vm416_vm0 = vmmov 0   ;;  %v417_v5 = vmov 0   ;;  %s529_s0 = inlined_call_operand.vmem [shape: bf16[2,128,128], index: 0, kind: input, shape index: {}]   ;;  %s530_s1 = inlined_call_operand.vmem [shape: bf16[4,128], index: 1, kind: input, shape index: {}]   ;;  %s531_s2 = inlined_call_operand.vmem [shape: f32[4,1], index: 2, kind: input, shape index: {}]   ;;  %s532_s3 = inlined_call_operand.vmem [shape: f32[2,4,128], index: 3, kind: input, shape index: {}]   ;;  %s533_s4 = inlined_call_operand.hbm [shape: f32[2,4,128], index: 4, kind: output, shape index: {0}]   ;;  %s534_s5 = inlined_call_operand.vmem [shape: f32[2,4,128], index: 5, kind: output, shape index: {1}]  }
   0x1   :  { %v375_v0 = vld [vmem:[%s529_s0] sm:$0xff]   ;;  %328 = vmatprep.subr.bf16.mxu0 %v415_v1  ;;  %348 = vmatprep.subr.bf16.mxu1 %v415_v1  ;;  %v377_v3 = vld [vmem:[%s529_s0 + $0x8] sm:$0xff]   ;;  %v379_v6 = vld [vmem:[%s529_s0 + $0x10] sm:$0xff]  }
   0x2   :  { %v376_v2 = vld [vmem:[%s529_s0 + $0x40] sm:$0xff]   ;;  %329 = vmatpush3.bf16.msra.mxu0 %v375_v0  ;;  %344 = vmatprep.mubr.msk.bf16.mxu0 %vm416_vm0, %v415_v1  ;;  %v378_v4 = vld [vmem:[%s529_s0 + $0x48] sm:$0xff]   ;;  %v380_v7 = vld [vmem:[%s529_s0 + $0x50] sm:$0xff]  }
   0x3   :  { %349 = vmatpush3.bf16.msra.mxu1 %v376_v2  ;;  %330 = vmatprep.subr.bf16.mxu0 %v415_v1  ;;  %v381_v8 = vld [vmem:[%s529_s0 + $0x18] sm:$0xff]   ;;  %v383_v10 = vld [vmem:[%s529_s0 + $0x20] sm:$0xff]  }
   0x4   :  { %350 = vmatprep.subr.bf16.mxu1 %v415_v1  ;;  %364 = vmatprep.mubr.msk.bf16.mxu1 %vm416_vm0, %v415_v1  ;;  %v382_v9 = vld [vmem:[%s529_s0 + $0x58] sm:$0xff]   ;;  %v384_v11 = vld [vmem:[%s529_s0 + $0x60] sm:$0xff]  }
   0x5   :  { %374 = vset.pattern.permute.xlu0 %v417_v5  ;;  %v22_v12 = vld [vmem:[%s531_s2] sm:$0xf] }
   0x6   :  { %331 = vmatpush3.bf16.msra.mxu0 %v377_v3 }
   0x7   :  { %351 = vmatpush3.bf16.msra.mxu1 %v378_v4  ;;  %332 = vmatprep.subr.bf16.mxu0 %v415_v1 }
   0x8   :  { %352 = vmatprep.subr.bf16.mxu1 %v415_v1 }
   0xa   :  { %333 = vmatpush3.bf16.msra.mxu0 %v379_v6 }
   0xb   :  { %353 = vmatpush3.bf16.msra.mxu1 %v380_v7  ;;  %334 = vmatprep.subr.bf16.mxu0 %v415_v1 }
   0xc   :  { %354 = vmatprep.subr.bf16.mxu1 %v415_v1 }
   0xe   :  { %335 = vmatpush3.bf16.msra.mxu0 %v381_v8 }
   0xf   :  { %355 = vmatpush3.bf16.msra.mxu1 %v382_v9  ;;  %336 = vmatprep.subr.bf16.mxu0 %v415_v1 }
  0x10   :  { %356 = vmatprep.subr.bf16.mxu1 %v415_v1 }
  0x11   :  { %11 = vsyncpa [#allocation3], 0  ;;  %41 = vperm.xlu0 %374, %v22_v12   ;;  %v385_v13 = vld [vmem:[%s529_s0 + $0x28] sm:$0xff]   ;;  %v387_v15 = vld [vmem:[%s529_s0 + $0x30] sm:$0xff]  }
  0x12   :  { %337 = vmatpush3.bf16.msra.mxu0 %v383_v10  ;;  %v386_v14 = vld [vmem:[%s529_s0 + $0x68] sm:$0xff]   ;;  %v388_v16 = vld [vmem:[%s529_s0 + $0x70] sm:$0xff]   ;;  %v389_v17 = vld [vmem:[%s529_s0 + $0x38] sm:$0xff]  }
  0x13   :  { %357 = vmatpush3.bf16.msra.mxu1 %v384_v11  ;;  %338 = vmatprep.subr.bf16.mxu0 %v415_v1  ;;  %v390_v18 = vld [vmem:[%s529_s0 + $0x78] sm:$0xff]   ;;  %v21_v19 = vld [vmem:[%s530_s1] sm:$0x3]  ;;  %s418_s0 = smov [#allocation2]   ;;  %v308_v37 = vld [vmem:[%s532_s3 + $0x4] sm:$0xf] }
  0x14   :  { %358 = vmatprep.subr.bf16.mxu1 %v415_v1  ;;  %s261_s28 = sshll.u32 %s418_s0, 4  ;;  %v137_v34 = vld [vmem:[%s532_s3] sm:$0xf]  ;;  %s262_s28 = int_to_ptr.vmem [resolvable:$true] %s261_s28 }
  0x15   :  { %s391_s9 = scalar_lea.vmem %s262_s28, 128  ;;  %p396_p1 = scmp.lt.s32.totalorder %s262_s28, %s262_s28 }
  0x16   :  { %339 = vmatpush3.bf16.msra.mxu0 %v385_v13  ;;  %p392_p0 = scmp.ne.s32.totalorder %s262_s28, %s391_s9  ;;  %p397_p2 = scmp.lt.s32.totalorder %s391_s9, %s391_s9 }
  0x17   :  { %359 = vmatpush3.bf16.msra.mxu1 %v386_v14  ;;  %340 = vmatprep.subr.bf16.mxu0 %v415_v1 }
  0x18   :  { %360 = vmatprep.subr.bf16.mxu1 %v415_v1  ;;  %p398_p3 = por %p397_p2, %p396_p1 }
  0x1a   :  { %341 = vmatpush3.bf16.msra.mxu0 %v387_v15  ;;  %p399_p4 = pnand %p398_p3, %p392_p0 }
  0x1b   :  { %361 = vmatpush3.bf16.msra.mxu1 %v388_v16  ;;  %342 = vmatprep.subr.bf16.mxu0 %v415_v1 }
  0x1c   :  { %362 = vmatprep.subr.bf16.mxu1 %v415_v1 }
  0x1e   :  { %343 = vmatpush3.bf16.msra.mxu0 %v389_v17 }
  0x1f   :  { %363 = vmatpush3.bf16.msra.mxu1 %v390_v18 }
  0x21   :  { %345 = vmatmul.mubr.bf16.vlgmr.msra.gmra.mrb[0].mxu0 %v21_v19 }
  0x22   :  { %365 = vmatmul.mubr.bf16.vlgmr.msra.gmra.mrb[0].mxu1 %v21_v19 }
  0x90   :  { %v42_v20 = vpop.permute.xlu0 %41 }
  0xf4   :  { %v126_v21 = vpop.f32.mrb[0].mxu0 }
  0xf5   :  { %v127_v22 = vadd.f32 %v126_v21, %v42_v20  ;;  %v239_v23 = vpop.f32.mrb[0].mxu1  ;;  %v346_v24 = vpop.f32.mrb[1].mxu0 }
  0xf6   :  { %v240_v25 = vadd.f32 %v239_v23, %v42_v20  ;;  %v366_v26 = vpop.f32.mrb[1].mxu1  ;;  %v129_v27 = vpop.f32.mrb[2].mxu0 }
  0xf7   :  { %vm132_vm1 = vcmp.ge.f32.partialorder %v127_v22, 0.0  ;;  %v133_v28 = vmul.f32 0.01, %v127_v22  ;;  %v242_v29 = vpop.f32.mrb[2].mxu1  ;;  %v347_v30 = vpop.f32.mrb[3].mxu0 }
  0xf8   :  { %vm245_vm2 = vcmp.ge.f32.partialorder %v240_v25, 0.0  ;;  %v246_v31 = vmul.f32 0.01, %v240_v25  ;;  %v367_v32 = vpop.f32.mrb[3].mxu1 }
  0xf9   :  { %v134_v33 = vsel %vm132_vm1, %v127_v22, %v133_v28 }
  0xfa   :  { %v135_v35 = vadd.f32 %v134_v33, %v127_v22  ;;  %v247_v36 = vsel %vm245_vm2, %v240_v25, %v246_v31 }
  0xfb   :  { %v248_v38 = vadd.f32 %v247_v36, %v240_v25 }
  0xfc   :  { %v138_v39 = vadd.f32 %v137_v34, %v135_v35  ;;  %136 = vst [vmem:[#allocation2] sm:$0xf] %v135_v35 }
  0xfd   :  { %v253_v40 = vadd.f32 %v308_v37, %v248_v38  ;;  %250 = vst [vmem:[#allocation2 + $0x4] sm:$0xf] %v248_v38 }
  0xfe   :  { %139 = vst [vmem:[%s534_s5] sm:$0xf] %v138_v39 }
  0xff   :  { %402 = shalt.err (!%p399_p4)
}
 0x100   :  { %s403_s3 = scalar_lea.hbm %s533_s4, 128 }
 0x101   :  { %p404_p5 = scmp.ne.s32.totalorder %s533_s4, %s403_s3  ;;  %p407_p6 = scmp.lt.u32.totalorder %s403_s3, %s533_s4 }
 0x103   :  { %p409_p7 = pnand %p407_p6, %p404_p5 }
 0x105   :  { %412 = shalt.err (!%p409_p7)
}
 0x106   :  { %s419_s16 = smov 64   ;;  %s420_s17 = smov 4   ;;  %309 = vst [vmem:[%s534_s5 + $0x4] sm:$0xf] %v253_v40 }
 0x107   :  { %267 = dma.vmem_to_hbm [thread:$0]  %s262_s28, 128, %s533_s4, [#allocation3], %s419_s16, %s419_s16, %s420_s17  }
 0x108   :  { %413 = dma.done.wait [#allocation3], 128  }
 0x109   :  { %414 = vsyncadd [#allocation3], 4294967168 }
 0x10a   :  { %275 = vsyncpa [#allocation3], 1 }

// kernel: u_mamba_block_downscale.4
= control target key start
LH: loop header
LB: loop body
LE: loop exit
PB: predicated region body
PF: predicated region fallthrough
CT: control target
= control target key end

     0   :  { %v376_v0 = vmov 0.0   ;;  %vm377_vm0 = vmmov 0   ;;  %v378_v4 = vmov 0   ;;  %s481_s0 = inlined_call_operand.vmem [shape: bf16[2,128,128], index: 0, kind: input, shape index: {}]   ;;  %s482_s2 = inlined_call_operand.vmem [shape: f32[4,1], index: 2, kind: input, shape index: {}]   ;;  %s483_s1 = inlined_call_operand.vmem [shape: bf16[4,128], index: 1, kind: input, shape index: {}]   ;;  %s484_s3 = inlined_call_operand.vmem [shape: f32[2,4,128], index: 3, kind: input, shape index: {}]   ;;  %s485_s4 = inlined_call_operand.vmem [shape: f32[2,4,128], index: 4, kind: output, shape index: {0}]   ;;  %s486_s5 = inlined_call_operand.vmem [shape: f32[2,4,128], index: 5, kind: output, shape index: {1}]  }
   0x1   :  { %316 = vmatprep.subr.bf16.mxu0 %v376_v0  ;;  %336 = vmatprep.subr.bf16.mxu1 %v376_v0  ;;  %v360_v1 = vld [vmem:[%s481_s0] sm:$0xff]   ;;  %v362_v3 = vld [vmem:[%s481_s0 + $0x8] sm:$0xff]   ;;  %v364_v6 = vld [vmem:[%s481_s0 + $0x10] sm:$0xff]  }
   0x2   :  { %v361_v2 = vld [vmem:[%s481_s0 + $0x40] sm:$0xff]   ;;  %332 = vmatprep.mubr.msk.bf16.mxu0 %vm377_vm0, %v376_v0  ;;  %352 = vmatprep.mubr.msk.bf16.mxu1 %vm377_vm0, %v376_v0  ;;  %v363_v5 = vld [vmem:[%s481_s0 + $0x48] sm:$0xff]   ;;  %v365_v7 = vld [vmem:[%s481_s0 + $0x50] sm:$0xff]  }
   0x3   :  { %317 = vmatpush3.bf16.msra.mxu0 %v360_v1  ;;  %359 = vset.pattern.permute.xlu0 %v378_v4  ;;  %v366_v8 = vld [vmem:[%s481_s0 + $0x18] sm:$0xff]   ;;  %v368_v10 = vld [vmem:[%s481_s0 + $0x20] sm:$0xff]   ;;  %v370_v13 = vld [vmem:[%s481_s0 + $0x28] sm:$0xff]  }
   0x4   :  { %337 = vmatpush3.bf16.msra.mxu1 %v361_v2  ;;  %318 = vmatprep.subr.bf16.mxu0 %v376_v0  ;;  %v367_v9 = vld [vmem:[%s481_s0 + $0x58] sm:$0xff]   ;;  %v369_v11 = vld [vmem:[%s481_s0 + $0x60] sm:$0xff]   ;;  %v371_v14 = vld [vmem:[%s481_s0 + $0x68] sm:$0xff]  }
   0x5   :  { %338 = vmatprep.subr.bf16.mxu1 %v376_v0  ;;  %v21_v12 = vld [vmem:[%s482_s2] sm:$0xf]  ;;  %v372_v15 = vld [vmem:[%s481_s0 + $0x30] sm:$0xff]   ;;  %v374_v17 = vld [vmem:[%s481_s0 + $0x38] sm:$0xff]  }
   0x6   :  { %40 = vperm.xlu0 %359, %v21_v12   ;;  %v373_v16 = vld [vmem:[%s481_s0 + $0x70] sm:$0xff]   ;;  %v375_v18 = vld [vmem:[%s481_s0 + $0x78] sm:$0xff]   ;;  %v20_v19 = vld [vmem:[%s483_s1] sm:$0x3] }
   0x7   :  { %319 = vmatpush3.bf16.msra.mxu0 %v362_v3  ;;  %v136_v34 = vld [vmem:[%s484_s3] sm:$0xf]  ;;  %v296_v37 = vld [vmem:[%s484_s3 + $0x4] sm:$0xf] }
   0x8   :  { %339 = vmatpush3.bf16.msra.mxu1 %v363_v5  ;;  %320 = vmatprep.subr.bf16.mxu0 %v376_v0 }
   0x9   :  { %340 = vmatprep.subr.bf16.mxu1 %v376_v0 }
   0xb   :  { %321 = vmatpush3.bf16.msra.mxu0 %v364_v6 }
   0xc   :  { %341 = vmatpush3.bf16.msra.mxu1 %v365_v7  ;;  %322 = vmatprep.subr.bf16.mxu0 %v376_v0 }
   0xd   :  { %342 = vmatprep.subr.bf16.mxu1 %v376_v0 }
   0xf   :  { %323 = vmatpush3.bf16.msra.mxu0 %v366_v8 }
  0x10   :  { %343 = vmatpush3.bf16.msra.mxu1 %v367_v9  ;;  %324 = vmatprep.subr.bf16.mxu0 %v376_v0 }
  0x11   :  { %344 = vmatprep.subr.bf16.mxu1 %v376_v0 }
  0x13   :  { %325 = vmatpush3.bf16.msra.mxu0 %v368_v10 }
  0x14   :  { %345 = vmatpush3.bf16.msra.mxu1 %v369_v11  ;;  %326 = vmatprep.subr.bf16.mxu0 %v376_v0 }
  0x15   :  { %346 = vmatprep.subr.bf16.mxu1 %v376_v0 }
  0x17   :  { %327 = vmatpush3.bf16.msra.mxu0 %v370_v13 }
  0x18   :  { %347 = vmatpush3.bf16.msra.mxu1 %v371_v14  ;;  %328 = vmatprep.subr.bf16.mxu0 %v376_v0 }
  0x19   :  { %348 = vmatprep.subr.bf16.mxu1 %v376_v0 }
  0x1b   :  { %329 = vmatpush3.bf16.msra.mxu0 %v372_v15 }
  0x1c   :  { %349 = vmatpush3.bf16.msra.mxu1 %v373_v16  ;;  %330 = vmatprep.subr.bf16.mxu0 %v376_v0 }
  0x1d   :  { %350 = vmatprep.subr.bf16.mxu1 %v376_v0 }
  0x1f   :  { %331 = vmatpush3.bf16.msra.mxu0 %v374_v17 }
  0x20   :  { %351 = vmatpush3.bf16.msra.mxu1 %v375_v18 }
  0x22   :  { %333 = vmatmul.mubr.bf16.vlgmr.msra.gmra.mrb[0].mxu0 %v20_v19 }
  0x23   :  { %353 = vmatmul.mubr.bf16.vlgmr.msra.gmra.mrb[0].mxu1 %v20_v19 }
  0x85   :  { %v41_v20 = vpop.permute.xlu0 %40 }
  0xf5   :  { %v125_v21 = vpop.f32.mrb[0].mxu0 }
  0xf6   :  { %v126_v22 = vadd.f32 %v125_v21, %v41_v20  ;;  %v238_v23 = vpop.f32.mrb[0].mxu1  ;;  %v334_v24 = vpop.f32.mrb[1].mxu0 }
  0xf7   :  { %v239_v25 = vadd.f32 %v238_v23, %v41_v20  ;;  %v354_v26 = vpop.f32.mrb[1].mxu1  ;;  %v128_v27 = vpop.f32.mrb[2].mxu0 }
  0xf8   :  { %vm131_vm1 = vcmp.ge.f32.partialorder %v126_v22, 0.0  ;;  %v132_v28 = vmul.f32 0.01, %v126_v22  ;;  %v241_v29 = vpop.f32.mrb[2].mxu1  ;;  %v335_v30 = vpop.f32.mrb[3].mxu0 }
  0xf9   :  { %vm244_vm2 = vcmp.ge.f32.partialorder %v239_v25, 0.0  ;;  %v245_v31 = vmul.f32 0.01, %v239_v25  ;;  %v355_v32 = vpop.f32.mrb[3].mxu1 }
  0xfa   :  { %v133_v33 = vsel %vm131_vm1, %v126_v22, %v132_v28 }
  0xfb   :  { %v134_v35 = vadd.f32 %v133_v33, %v126_v22  ;;  %v246_v36 = vsel %vm244_vm2, %v239_v25, %v245_v31 }
  0xfc   :  { %v247_v38 = vadd.f32 %v246_v36, %v239_v25 }
  0xfd   :  { %135 = vst [vmem:[%s485_s4] sm:$0xf] %v134_v35  ;;  %v137_v39 = vadd.f32 %v136_v34, %v134_v35 }
  0xfe   :  { %295 = vst [vmem:[%s485_s4 + $0x4] sm:$0xf] %v247_v38  ;;  %v252_v40 = vadd.f32 %v296_v37, %v247_v38 }
  0xff   :  { %138 = vst [vmem:[%s486_s5] sm:$0xf] %v137_v39 }
 0x100   :  { %297 = vst [vmem:[%s486_s5 + $0x4] sm:$0xf] %v252_v40 }

// kernel: u_mamba_block_downscale.6
= control target key start
LH: loop header
LB: loop body
LE: loop exit
PB: predicated region body
PF: predicated region fallthrough
CT: control target
= control target key end

     0   :  { %v1260_v16 = vmov 0   ;;  %v99_v32 = vlaneseq  ;;  %v1261_v36 = vmov 0.0|0.0   ;;  %vm1262_vm0 = vmmov 0   ;;  %s1613_s0 = inlined_call_operand.vmem [shape: f32[8,128], index: 0, kind: input, shape index: {}]   ;;  %s1614_s3 = inlined_call_operand.vmem [shape: bf16[128,256], index: 3, kind: input, shape index: {}]   ;;  %s1615_s1 = inlined_call_operand.vmem [shape: f32[1,128], index: 1, kind: input, shape index: {}]   ;;  %s1616_s2 = inlined_call_operand.vmem [shape: f32[1,128], index: 2, kind: input, shape index: {}]   ;;  %s1617_s4 = inlined_call_operand.vmem [shape: f32[1,256], index: 4, kind: input, shape index: {}]   ;;  %s1618_s6 = inlined_call_operand.vmem [shape: f32[4,1], index: 6, kind: input, shape index: {}]   ;;  %s1619_s11 = inlined_call_operand.vmem [shape: f32[4,1], index: 11, kind: input, shape index: {}]   ;;  %s1620_s5 = inlined_call_operand.vmem [shape: f32[4,12], index: 5, kind: input, shape index: {}]   ;;  %s1621_s7 = inlined_call_operand.vmem [shape: bf16[128,12], index: 7, kind: input, shape index: {}]   ;;  %s1622_s9 = inlined_call_operand.vmem [shape: f32[4,128], index: 9, kind: input, shape index: {}]   ;;  %s1623_s8 = inlined_call_operand.vmem [shape: f32[1,12], index: 8, kind: input, shape index: {}]   ;;  %s1624_s13 = inlined_call_operand.vmem [shape: bf16[128,128], index: 13, kind: input, shape index: {}]   ;;  %s1625_s10 = inlined_call_operand.vmem [shape: f32[1,128], index: 10, kind: input, shape index: {}]   ;;  %s1626_s12 = inlined_call_operand.vmem [shape: f32[1,128], index: 12, kind: input, shape index: {}]   ;;  %s1627_s14 = inlined_call_operand.vmem [shape: f32[1,128], index: 14, kind: input, shape index: {}]   ;;  %s1628_s15 = inlined_call_operand.vmem [shape: f32[8,128], index: 15, kind: output, shape index: {}]  }
   0x1   :  { %v51_v0 = vld [vmem:[%s1613_s0] sm:$0xff]  ;;  %v1197_v3 = vld [vmem:[%s1614_s3 + $0x14] ss:$8 sps:$4 sm:$0xff]   ;;  %v1199_v4 = vld [vmem:[%s1614_s3 + $0x10] ss:$8 sps:$4 sm:$0xff]   ;;  %221 = vmatprep.mubr.bf16.mxu0 %v1260_v16  ;;  %1192 = vset.pattern.permute.xlu1 %v1260_v16  ;;  %v1263_v38 = vmov 0.0  }
   0x2   :  { %52 = vadd.xlane.f32.xlu0 %v51_v0  ;;  %v1194_v1 = vld [vmem:[%s1614_s3 + $0x4] ss:$8 sps:$4 sm:$0xff]   ;;  %v1196_v2 = vld [vmem:[%s1614_s3] ss:$8 sps:$4 sm:$0xff]   ;;  %v1203_v11 = vld [vmem:[%s1614_s3 + $0x34] ss:$8 sps:$4 sm:$0xff]   ;;  %1177 = vmatprep.subr.bf16.mxu1 %v1261_v36 }
   0x3   :  { %189 = vmatprep.subr.bf16.mxu0 %v1194_v1  ;;  %v1200_v5 = vld [vmem:[%s1614_s3 + $0x24] ss:$8 sps:$4 sm:$0xff]   ;;  %v1202_v10 = vld [vmem:[%s1614_s3 + $0x20] ss:$8 sps:$4 sm:$0xff]   ;;  %v1205_v12 = vld [vmem:[%s1614_s3 + $0x30] ss:$8 sps:$4 sm:$0xff]   ;;  %1193 = vset.pattern.permute.xlu0 %v1260_v16 }
   0x4   :  { %190 = vmatpush1.bf16.msra.mxu0 %v1196_v2  ;;  %v1206_v13 = vld [vmem:[%s1614_s3 + $0x44] ss:$8 sps:$4 sm:$0xff]   ;;  %v1208_v14 = vld [vmem:[%s1614_s3 + $0x40] ss:$8 sps:$4 sm:$0xff]   ;;  %v1209_v15 = vld [vmem:[%s1614_s3 + $0x54] ss:$8 sps:$4 sm:$0xff]   ;;  %1122 = vmatprep.mubr.msk.f32.mxu1 %vm1262_vm0, %v1263_v38 }
   0x5   :  { %191 = vmatprep.subr.bf16.mxu0 %v1197_v3  ;;  %v1211_v17 = vld [vmem:[%s1614_s3 + $0x50] ss:$8 sps:$4 sm:$0xff]   ;;  %v1212_v18 = vld [vmem:[%s1614_s3 + $0x64] ss:$8 sps:$4 sm:$0xff]   ;;  %v1214_v19 = vld [vmem:[%s1614_s3 + $0x60] ss:$8 sps:$4 sm:$0xff]  }
   0x6   :  { %v1215_v20 = vld [vmem:[%s1614_s3 + $0x74] ss:$8 sps:$4 sm:$0xff]   ;;  %v1217_v21 = vld [vmem:[%s1614_s3 + $0x70] ss:$8 sps:$4 sm:$0xff]   ;;  %v1048_v26 = vld [vmem:[%s1615_s1] ss:$0 sm:$0xff] }
   0x7   :  { %v1049_v28 = vld [vmem:[%s1616_s2] ss:$0 sm:$0xff]  ;;  %v1404_v33 = vshrl.u32 %v99_v32, 7  ;;  %s1264_s1 = smov 1   ;;  %s1265_s2 = smov 127   ;;  %vm241_vm1 = vcmask 7168  }
   0x8   :  { %192 = vmatpush1.bf16.msra.mxu0 %v1199_v4  ;;  %v1412_v35 = vld [vmem:[%s1617_s4] sm:$0x3]  ;;  %vm250_vm2 = vcmask 1043456   ;;  %vm246_vm3 = vcmask 1039360   ;;  %vm1266_vm4 = vmmov 1   ;;  %vm257_vm6 = vcmask 97280  }
   0x9   :  { %193 = vmatprep.subr.bf16.mxu0 %v1200_v5  ;;  %v1407_v34 = vsub.s32 0, %v1404_v33  ;;  %v236_v45 = vld [vmem:[%s1618_s6] sm:$0xf]  ;;  %vm1179_vm5 = vmpackc.low %vm250_vm2, %vm1266_vm4  ;;  %v1219_v60 = vld [vmem:[%s1621_s7 + $0x8] sm:$0xff]   ;;  %vm540_vm7 = vcmask 31744  }
   0xa   :  { %v626_v46 = vld [vmem:[%s1619_s11] sm:$0xf]  ;;  %v1220_v61 = vld [vmem:[%s1621_s7 + $0x10] sm:$0xff]   ;;  %v1221_v62 = vld [vmem:[%s1621_s7 + $0x18] sm:$0xff]  }
   0xb   :  { %v102_v37 = vrot.slane %v1412_v35, %v1407_v34  ;;  %v235_v56 = vld [vmem:[%s1620_s5] sm:$0xf]  ;;  %v1224_v1 = vld [vmem:[%s1621_s7 + $0x30] sm:$0xff]   ;;  %v1225_v2 = vld [vmem:[%s1621_s7 + $0x38] sm:$0xff]  }
   0xc   :  { %194 = vmatpush1.bf16.msra.mxu0 %v1202_v10  ;;  %v1218_v59 = vld [vmem:[%s1621_s7] sm:$0xff]  }
   0xd   :  { %195 = vmatprep.subr.bf16.mxu0 %v1203_v11  ;;  %v1222_v63 = vld [vmem:[%s1621_s7 + $0x20] sm:$0xff]  }
  0x10   :  { %196 = vmatpush1.bf16.msra.mxu0 %v1205_v12 }
  0x11   :  { %197 = vmatprep.subr.bf16.mxu0 %v1206_v13 }
  0x14   :  { %198 = vmatpush1.bf16.msra.mxu0 %v1208_v14 }
  0x15   :  { %199 = vmatprep.subr.bf16.mxu0 %v1209_v15 }
  0x18   :  { %200 = vmatpush1.bf16.msra.mxu0 %v1211_v17  ;;  %v532_v17 = vld [vmem:[%s1622_s9] sm:$0xf] }
  0x19   :  { %201 = vmatprep.subr.bf16.mxu0 %v1212_v18  ;;  %v1070_v18 = vld [vmem:[%s1623_s8] ss:$0 sm:$0xff] }
  0x1c   :  { %202 = vmatpush1.bf16.msra.mxu0 %v1214_v19 }
  0x1d   :  { %203 = vmatprep.subr.bf16.mxu0 %v1215_v20 }
  0x20   :  { %204 = vmatpush1.bf16.msra.mxu0 %v1217_v21 }
  0x21   :  { %1157 = vmatprep.subr.bf16.mxu0 %v1263_v38 }
  0x8f   :  { %v53_v6 = vpop.xlane.xlu0 %52 }
  0x90   :  { %v55_v7 = vmul.f32 0.0078125, %v53_v6 }
  0x92   :  { %v56_v8 = vsub.f32 %v51_v0, %v55_v7  ;;  %v1223_v0 = vld [vmem:[%s1621_s7 + $0x28] sm:$0xff]  }
  0x94   :  { %v57_v9 = vmul.f32 %v56_v8, %v56_v8 }
  0x96   :  { %58 = vadd.xlane.f32.xlu0 %v57_v9 }
 0x123   :  { %v59_v22 = vpop.xlane.xlu0 %58 }
 0x124   :  { %v60_v23 = vmul.f32 0.0078125, %v59_v22  ;;  %v1486_v22 = vsub.s32 2, %v1404_v33 }
 0x126   :  { %v61_v24 = vadd.f32 1e-05, %v60_v23 }
 0x128   :  { %1234 = vrsqrt.f32 %v61_v24 }
 0x132   :  { %v1235_v25 = vpop.eup %1234 }
 0x133   :  { %v63_v27 = vmul.f32 %v1235_v25, %v56_v8 }
 0x135   :  { %v71_v29 = vmul.f32 %v1048_v26, %v63_v27  ;;  %v1491_v27 = vsub.s32 3, %v1404_v33 }
 0x137   :  { %v79_v30 = vadd.f32 %v1049_v28, %v71_v29  ;;  %v1494_v28 = vsub.s32 4, %v1404_v33 }
 0x139   :  { %v80_v31 = vpack.c.bf16 %v79_v30, %v79_v30 }
 0x13b   :  { %222 = vmatmul.mubr.bf16.vlgmr.msra.gmra.mrb[0].mxu0 %v80_v31  ;;  %v1499_v31 = vsub.s32 1, %v1404_v33 }
 0x13c   :  { %1173 = vmatprep.mubr.msk.bf16.mxu0 %vm1262_vm0, %v1263_v38 }
 0x20e   :  { %v223_v39 = vpop.f32.mrb[0].mxu0 }
 0x20f   :  { %v224_v40 = vadd.f32 %v223_v39, %v102_v37  ;;  %v1421_v41 = vpop.f32.mrb[1].mxu0  ;;  %v1507_v39 = vsub.s32 6, %v1404_v33 }
 0x210   :  { %v227_v42 = vpop.f32.mrb[2].mxu0 }
 0x211   :  { %v228_v43 = vpop.f32.mrb[3].mxu0  ;;  %238 = vrot.lane.b32.xlu1 %v224_v40, %s1264_s1  ;;  %v248_v44 = vrot.slane %v224_v40, 4  ;;  %v1511_v42 = vsub.s32 7, %v1404_v33 }
 0x213   :  { %335 = vrot.lane.b32.xlu0 %v248_v44, %s1264_s1 }
 0x215   :  { %243 = vrot.lane.b32.xlu1 %v224_v40, %s1265_s2 }
 0x219   :  { %254 = vperm.xlu1 %1192, %v236_v45   ;;  %v1228_v45 = vld [vmem:[%s1624_s13 + $0x10] sm:$0xff]  }
 0x21d   :  { %633 = vperm.xlu1 %1192, %v626_v46   ;;  %v1229_v46 = vld [vmem:[%s1624_s13 + $0x18] sm:$0xff]  }
 0x283   :  { %v239_v47 = vpop.permute.xlu1 %238 }
 0x284   :  { %v242_v48 = vsel %vm241_vm1, 0.0, %v239_v47  ;;  %v1230_v47 = vld [vmem:[%s1624_s13 + $0x20] sm:$0xff]  }
 0x285   :  { %v336_v49 = vpop.permute.xlu0 %335  ;;  %v251_v52 = vsel %vm250_vm2, %v242_v48, %v248_v44  ;;  %v1226_v44 = vld [vmem:[%s1624_s13] sm:$0xff]   ;;  %v1231_v48 = vld [vmem:[%s1624_s13 + $0x28] sm:$0xff]  }
 0x286   :  { %v338_v53 = vsel %vm241_vm1, 0.0, %v336_v49  ;;  %1158 = vmatpush3.bf16.msra.mxu0 %v1226_v44  ;;  %v1232_v49 = vld [vmem:[%s1624_s13 + $0x30] sm:$0xff]  }
 0x287   :  { %v244_v50 = vpop.permute.xlu1 %243  ;;  %v340_v57 = vsel %vm250_vm2, %v338_v53, %v224_v40  ;;  %1159 = vmatprep.subr.bf16.mxu0 %v1263_v38 }
 0x288   :  { %v247_v51 = vsel %vm246_vm3, %v244_v50, 0.0  ;;  %v1233_v50 = vld [vmem:[%s1624_s13 + $0x38] sm:$0xff]  }
 0x289   :  { %v1178_v54 = vpack.c.bf16 %v247_v51, %v251_v52  ;;  %v339_v55 = vrot.slane %v247_v51, 4  ;;  %v1079_v51 = vld [vmem:[%s1625_s10] ss:$0 sm:$0xff] }
 0x28b   :  { %1180 = vmatpush3.bf16.msk.msra.mxu1 %vm1179_vm5, %v1178_v54  ;;  %v1182_v58 = vpack.c.bf16 %v339_v55, %v340_v57 }
 0x28c   :  { %1181 = vmatprep.subr.bf16.mxu1 %v1261_v36  ;;  %v1503_v36 = vsub.s32 5, %v1404_v33  ;;  %v1227_v33 = vld [vmem:[%s1624_s13 + $0x8] sm:$0xff]  }
 0x28d   :  { %1160 = vmatpush3.bf16.msra.mxu0 %v1227_v33 }
 0x28e   :  { %1123 = vmatmul.mubr.msk.f32.vlgmr.msra.gmra.mrb[0].mxu1 %vm257_vm6, %v235_v56  ;;  %1161 = vmatprep.subr.bf16.mxu0 %v1263_v38 }
 0x28f   :  { %1184 = vmatpush3.bf16.msk.msra.mxu1 %vm1179_vm5, %v1182_v58  ;;  %1129 = vmatprep.mubr.msk.f32.mxu1 %vm1262_vm0, %v1263_v38 }
 0x290   :  { %1132 = vmatprep.subr.bf16.mxu1 %v1263_v38 }
 0x291   :  { %1162 = vmatpush3.bf16.msra.mxu0 %v1228_v45 }
 0x292   :  { %1130 = vmatmul.mubr.msk.f32.vlgmr.msra.gmra.mrb[2].mxu1 %vm257_vm6, %v235_v56  ;;  %1163 = vmatprep.subr.bf16.mxu0 %v1263_v38 }
 0x293   :  { %1148 = vmatprep.mubr.msk.bf16.mxu1 %vm1262_vm0, %v1263_v38  ;;  %1133 = vmatpush3.bf16.msra.mxu1 %v1218_v59 }
 0x294   :  { %1134 = vmatprep.subr.bf16.mxu1 %v1263_v38 }
 0x295   :  { %1164 = vmatpush3.bf16.msra.mxu0 %v1229_v46 }
 0x296   :  { %1165 = vmatprep.subr.bf16.mxu0 %v1263_v38 }
 0x297   :  { %1135 = vmatpush3.bf16.msra.mxu1 %v1219_v60 }
 0x298   :  { %1136 = vmatprep.subr.bf16.mxu1 %v1263_v38  ;;  %v255_v3 = vpop.permute.xlu1 %254 }
 0x299   :  { %1166 = vmatpush3.bf16.msra.mxu0 %v1230_v47 }
 0x29a   :  { %1167 = vmatprep.subr.bf16.mxu0 %v1263_v38 }
 0x29b   :  { %1137 = vmatpush3.bf16.msra.mxu1 %v1220_v61 }
 0x29c   :  { %1138 = vmatprep.subr.bf16.mxu1 %v1263_v38  ;;  %v1548_v58 = vpop.permute.xlu1 %633 }
 0x29d   :  { %1168 = vmatpush3.bf16.msra.mxu0 %v1231_v48 }
 0x29e   :  { %1169 = vmatprep.subr.bf16.mxu0 %v1263_v38 }
 0x29f   :  { %1139 = vmatpush3.bf16.msra.mxu1 %v1221_v62 }
 0x2a0   :  { %1140 = vmatprep.subr.bf16.mxu1 %v1263_v38 }
 0x2a1   :  { %1170 = vmatpush3.bf16.msra.mxu0 %v1232_v49 }
 0x2a2   :  { %1171 = vmatprep.subr.bf16.mxu0 %v1263_v38 }
 0x2a3   :  { %1141 = vmatpush3.bf16.msra.mxu1 %v1222_v63 }
 0x2a4   :  { %1142 = vmatprep.subr.bf16.mxu1 %v1263_v38 }
 0x2a5   :  { %1172 = vmatpush3.bf16.msra.mxu0 %v1233_v50 }
 0x2a7   :  { %1143 = vmatpush3.bf16.msra.mxu1 %v1223_v0 }
 0x2a8   :  { %1144 = vmatprep.subr.bf16.mxu1 %v1263_v38 }
 0x2ab   :  { %1145 = vmatpush3.bf16.msra.mxu1 %v1224_v1 }
 0x2ac   :  { %1146 = vmatprep.subr.bf16.mxu1 %v1263_v38 }
 0x2af   :  { %1147 = vmatpush3.bf16.msra.mxu1 %v1225_v2 }
 0x2b0   :  { %1152 = vmatprep.subr.mxu1 %v1263_v38 }
 0x361   :  { %v330_v4 = vpop.f32.mrb[0].mxu1 }
 0x362   :  { %v331_v5 = vadd.f32 %v330_v4, %v255_v3  ;;  %v1124_v6 = vpop.f32.mrb[1].mxu1 }
 0x364   :  { %334 = vst [vmem:[#allocation2] sm:$0xf] %v331_v5 }
 0x365   :  { %v409_v7 = vpop.f32.mrb[2].mxu1 }
 0x366   :  { %v410_v8 = vadd.f32 %v409_v7, %v255_v3  ;;  %v1131_v9 = vpop.f32.mrb[3].mxu1 }
 0x368   :  { %413 = vst [vmem:[#allocation2 + $0x4] sm:$0xf] %v410_v8 }
 0x36f   :  { %v414_v10 = vld [vmem:[#allocation2] sm:$0xff] }
 0x370   :  { %v415_v11 = vmul.f32 0.5, %v414_v10 }
 0x372   :  { %1236 = vtanh.f32 %v415_v11 }
 0x37c   :  { %v1237_v12 = vpop.eup %1236 }
 0x37d   :  { %v417_v13 = vadd.f32 1.0, %v1237_v12 }
 0x37f   :  { %v418_v14 = vmul.f32 0.5, %v417_v13 }
 0x381   :  { %v1472_v15 = vmul.f32 %v418_v14, %v414_v10 }
 0x383   :  { %v420_v16 = vpack.c.bf16 %v1472_v15, %v1472_v15  ;;  %v723_v5 = vrot.slane %v1472_v15, %v1486_v22  ;;  %v759_v6 = vrot.slane %v1472_v15, %v1491_v27  ;;  %v651_v11 = vrot.slane %v1472_v15, %v1407_v34 }
 0x384   :  { %v687_v12 = vrot.slane %v1472_v15, %v1499_v31  ;;  %v831_v33 = vrot.slane %v1472_v15, %v1503_v36  ;;  %v867_v45 = vrot.slane %v1472_v15, %v1507_v39  ;;  %v903_v48 = vrot.slane %v1472_v15, %v1511_v42 }
 0x385   :  { %1149 = vmatmul.mubr.bf16.vlgmr.msra.gmra.mrb[4].mxu1 %v420_v16 }
 0x386   :  { %1153 = vmatpush3.msk.msra.mxu1 %vm250_vm2, %v532_v17  ;;  %1154 = vmatprep.mubr.msk.f32.mxu1 %vm1262_vm0, %v1263_v38 }
 0x458   :  { %v526_v19 = vpop.f32.mrb[4].mxu1 }
 0x459   :  { %v527_v20 = vadd.f32 %v1070_v18, %v526_v19  ;;  %v1150_v21 = vpop.f32.mrb[5].mxu1 }
 0x45a   :  { %v529_v23 = vpop.f32.mrb[6].mxu1  ;;  %v795_v21 = vrot.slane %v1472_v15, %v1494_v28 }
 0x45b   :  { %v1151_v24 = vpop.f32.mrb[7].mxu1  ;;  %1155 = vmatmul.mubr.msk.f32.vlgmr.msra.gmra.mrb[8].mxu1 %vm540_vm7, %v527_v20  ;;  %v714_v25 = vrot.slane %v527_v20, %v1486_v22  ;;  %v642_v26 = vrot.slane %v527_v20, %v1407_v34  ;;  %v750_v29 = vrot.slane %v527_v20, %v1491_v27  ;;  %v786_v30 = vrot.slane %v527_v20, %v1494_v28 }
 0x45c   :  { %v678_v32 = vrot.slane %v527_v20, %v1499_v31  ;;  %v822_v37 = vrot.slane %v527_v20, %v1503_v36  ;;  %v858_v40 = vrot.slane %v527_v20, %v1507_v39  ;;  %v894_v43 = vrot.slane %v527_v20, %v1511_v42 }
 0x45d   :  { %717 = vbcast.lane.b32.xlu0 %v714_v25, 260  ;;  %645 = vbcast.lane.b32.xlu1 %v642_v26, 260 }
 0x461   :  { %753 = vbcast.lane.b32.xlu0 %v750_v29, 260  ;;  %789 = vbcast.lane.b32.xlu1 %v786_v30, 260 }
 0x465   :  { %657 = vbcast.lane.b32.xlu0 %v642_v26, 264  ;;  %681 = vbcast.lane.b32.xlu1 %v678_v32, 260 }
 0x469   :  { %729 = vbcast.lane.b32.xlu0 %v714_v25, 264  ;;  %825 = vbcast.lane.b32.xlu1 %v822_v37, 260 }
 0x46d   :  { %801 = vbcast.lane.b32.xlu0 %v786_v30, 264  ;;  %861 = vbcast.lane.b32.xlu1 %v858_v40, 260 }
 0x471   :  { %873 = vbcast.lane.b32.xlu0 %v858_v40, 264  ;;  %897 = vbcast.lane.b32.xlu1 %v894_v43, 260 }
 0x475   :  { %693 = vbcast.lane.b32.xlu1 %v678_v32, 264 }
 0x479   :  { %765 = vbcast.lane.b32.xlu1 %v750_v29, 264 }
 0x47d   :  { %837 = vbcast.lane.b32.xlu1 %v822_v37, 264 }
 0x481   :  { %909 = vbcast.lane.b32.xlu1 %v894_v43, 264 }
 0x4cf   :  { %v646_v59 = vpop.permute.xlu1 %645  ;;  %v718_v0 = vpop.permute.xlu0 %717 }
 0x4d3   :  { %v790_v62 = vpop.permute.xlu1 %789  ;;  %v754_v16 = vpop.permute.xlu0 %753 }
 0x4d7   :  { %v682_v38 = vpop.permute.xlu1 %681 }
 0x4db   :  { %v826_v3 = vpop.permute.xlu1 %825 }
 0x52e   :  { %v613_v52 = vpop.f32.mrb[8].mxu1 }
 0x52f   :  { %v614_v53 = vadd.f32 %v1079_v51, %v613_v52  ;;  %v1156_v54 = vpop.f32.mrb[9].mxu1 }
 0x531   :  { %v618_v55 = vand.u32 2147483647, %v614_v53  ;;  %v617_v1 = vmax.f32 %v614_v53, 0.0 }
 0x533   :  { %v619_v56 = vsub.f32 0.0, %v618_v55 }
 0x535   :  { %v620_v57 = vmul.f32 1.442695, %v619_v56 }
 0x537   :  { %1238 = vpow2.f32 %v620_v57 }
 0x541   :  { %v1239_v60 = vpop.eup %1238 }
 0x542   :  { %v622_v61 = vadd.f32 1.0, %v1239_v60 }
 0x544   :  { %1240 = vlog2.f32 %v622_v61 }
 0x54e   :  { %v1241_v63 = vpop.eup %1240 }
 0x54f   :  { %v624_v2 = vmul.f32 0.6931472, %v1241_v63 }
 0x551   :  { %v625_v4 = vadd.f32 %v624_v2, %v617_v1 }
 0x553   :  { %v630_v7 = vrot.slane %v625_v4, %v1407_v34  ;;  %v671_v8 = vrot.slane %v625_v4, %v1499_v31  ;;  %v707_v9 = vrot.slane %v625_v4, %v1486_v22  ;;  %v743_v10 = vrot.slane %v625_v4, %v1491_v27  ;;  %v862_v22 = vpop.permute.xlu1 %861 }
 0x554   :  { %v779_v13 = vrot.slane %v625_v4, %v1494_v28  ;;  %v815_v14 = vrot.slane %v625_v4, %v1503_v36  ;;  %v851_v24 = vrot.slane %v625_v4, %v1507_v39  ;;  %v887_v29 = vrot.slane %v625_v4, %v1511_v42  ;;  %v658_v39 = vpop.permute.xlu0 %657 }
 0x555   :  { %v636_v17 = vmul.f32 %v1548_v58, %v630_v7  ;;  %v647_v18 = vmul.f32 %v646_v59, %v630_v7  ;;  %v672_v19 = vmul.f32 %v671_v8, %v1548_v58  ;;  %v683_v20 = vmul.f32 %v682_v38, %v671_v8 }
 0x556   :  { %v719_v23 = vmul.f32 %v718_v0, %v707_v9  ;;  %v755_v34 = vmul.f32 %v754_v16, %v743_v10  ;;  %v708_v32 = vmul.f32 %v707_v9, %v1548_v58  ;;  %v780_v43 = vmul.f32 %v779_v13, %v1548_v58 }
 0x557   :  { %v637_v25 = vmul.f32 1.442695, %v636_v17  ;;  %v652_v26 = vmul.f32 %v651_v11, %v647_v18  ;;  %v688_v27 = vmul.f32 %v687_v12, %v683_v20  ;;  %v673_v30 = vmul.f32 1.442695, %v672_v19  ;;  %v898_v52 = vpop.permute.xlu1 %897 }
 0x558   :  { %v724_v37 = vmul.f32 %v723_v5, %v719_v23  ;;  %v1571_v40 = vmul.f32 %v759_v6, %v755_v34  ;;  %v791_v28 = vmul.f32 %v790_v62, %v779_v13  ;;  %v816_v44 = vmul.f32 %v815_v14, %v1548_v58  ;;  %v730_v0 = vpop.permute.xlu0 %729 }
 0x559   :  { %1242 = vpow2.f32 %v637_v25  ;;  %v827_v46 = vmul.f32 %v826_v3, %v815_v14  ;;  %v863_v47 = vmul.f32 %v862_v22, %v851_v24  ;;  %v744_v49 = vmul.f32 %v743_v10, %v1548_v58 }
 0x55a   :  { %v781_v50 = vmul.f32 1.442695, %v780_v43  ;;  %v796_v51 = vmul.f32 %v795_v21, %v791_v28  ;;  %1244 = vpow2.f32 %v673_v30  ;;  %v709_v53 = vmul.f32 1.442695, %v708_v32 }
 0x55b   :  { %v832_v54 = vmul.f32 %v831_v33, %v827_v46  ;;  %v868_v55 = vmul.f32 %v867_v45, %v863_v47  ;;  %v817_v56 = vmul.f32 1.442695, %v816_v44  ;;  %v852_v36 = vmul.f32 %v851_v24, %v1548_v58  ;;  %v694_v38 = vpop.permute.xlu1 %693 }
 0x55c   :  { %1246 = vpow2.f32 %v781_v50  ;;  %v899_v57 = vmul.f32 %v898_v52, %v887_v29  ;;  %v745_v60 = vmul.f32 1.442695, %v744_v49  ;;  %v888_v61 = vmul.f32 %v887_v29, %v1548_v58  ;;  %v802_v14 = vpop.permute.xlu0 %801 }
 0x55d   :  { %1248 = vpow2.f32 %v709_v53  ;;  %v853_v42 = vmul.f32 1.442695, %v852_v36  ;;  %v106_v8 = vrot.slane %v1412_v35, %v1499_v31 }
 0x55e   :  { %v1583_v59 = vmul.f32 %v903_v48, %v899_v57  ;;  %1250 = vpow2.f32 %v817_v56  ;;  %v889_v1 = vmul.f32 1.442695, %v888_v61 }
 0x55f   :  { %1252 = vpow2.f32 %v745_v60  ;;  %v766_v9 = vpop.permute.xlu1 %765  ;;  %v1590_v21 = vadd.f32 %v1421_v41, %v106_v8 }
 0x560   :  { %1254 = vpow2.f32 %v853_v42 }
 0x561   :  { %1256 = vpow2.f32 %v889_v1  ;;  %v230_v41 = vmul.f32 0.5, %v1590_v21 }
 0x563   :  { %v1243_v62 = vpop.eup %1242  ;;  %1258 = vtanh.f32 %v230_v41 }
 0x564   :  { %v653_v63 = vmul.f32 0.0, %v1243_v62  ;;  %v1245_v2 = vpop.eup %1244 }
 0x566   :  { %v654_v3 = vadd.f32 %v653_v63, %v652_v26  ;;  %v1247_v4 = vpop.eup %1246  ;;  %v838_v26 = vpop.permute.xlu1 %837 }
 0x567   :  { %v797_v7 = vmul.f32 0.0, %v1247_v4  ;;  %v1249_v10 = vpop.eup %1248 }
 0x568   :  { %v659_v5 = vmul.f32 %v658_v39, %v654_v3  ;;  %v689_v6 = vmul.f32 %v1245_v2, %v654_v3  ;;  %v1251_v13 = vpop.eup %1250 }
 0x569   :  { %v798_v12 = vadd.f32 %v797_v7, %v796_v51  ;;  %v1253_v23 = vpop.eup %1252  ;;  %v874_v51 = vpop.permute.xlu0 %873 }
 0x56a   :  { %v660_v58 = vsel %vm250_vm2, %v659_v5, 0.0  ;;  %v690_v11 = vadd.f32 %v689_v6, %v688_v27  ;;  %v1255_v25 = vpop.eup %1254  ;;  %v910_v1 = vpop.permute.xlu1 %909 }
 0x56b   :  { %v661_v16 = vrot.slane %v660_v58, 4  ;;  %v803_v19 = vmul.f32 %v802_v14, %v798_v12  ;;  %v833_v20 = vmul.f32 %v1251_v13, %v798_v12  ;;  %v1257_v50 = vpop.eup %1256 }
 0x56c   :  { %v695_v17 = vmul.f32 %v694_v38, %v690_v11  ;;  %v725_v18 = vmul.f32 %v1249_v10, %v690_v11 }
 0x56d   :  { %v662_v22 = vadd.f32 %v661_v16, %v660_v58  ;;  %v804_v34 = vsel %vm250_vm2, %v803_v19, 0.0  ;;  %v834_v24 = vadd.f32 %v833_v20, %v832_v54 }
 0x56e   :  { %v696_v35 = vsel %vm250_vm2, %v695_v17, 0.0  ;;  %v726_v31 = vadd.f32 %v725_v18, %v724_v37  ;;  %v805_v29 = vrot.slane %v804_v34, 4 }
 0x56f   :  { %v697_v27 = vrot.slane %v696_v35, 4  ;;  %v663_v30 = vrot.slane %v662_v22, 2  ;;  %v839_v28 = vmul.f32 %v838_v26, %v834_v24  ;;  %v869_v44 = vmul.f32 %v1255_v25, %v834_v24 }
 0x570   :  { %v731_v32 = vmul.f32 %v730_v0, %v726_v31  ;;  %v761_v43 = vmul.f32 %v1253_v23, %v726_v31  ;;  %v806_v46 = vadd.f32 %v805_v29, %v804_v34 }
 0x571   :  { %v664_v33 = vadd.f32 %v663_v30, %v662_v22  ;;  %v698_v45 = vadd.f32 %v697_v27, %v696_v35  ;;  %v840_v48 = vsel %vm250_vm2, %v839_v28, 0.0  ;;  %v870_v49 = vadd.f32 %v869_v44, %v868_v55  ;;  %v1082_v44 = vld [vmem:[%s1626_s12] ss:$0 sm:$0xff] }
 0x572   :  { %v732_v47 = vsel %vm250_vm2, %v731_v32, 0.0  ;;  %v762_v37 = vadd.f32 %v761_v43, %v1571_v40  ;;  %v841_v53 = vrot.slane %v840_v48, 4  ;;  %v807_v60 = vrot.slane %v806_v46, 2  ;;  %v1259_v32 = vpop.eup %1258 }
 0x573   :  { %v733_v52 = vrot.slane %v732_v47, 4  ;;  %v665_v54 = vrot.slane %v664_v33, 1  ;;  %v699_v56 = vrot.slane %v698_v45, 2  ;;  %v875_v57 = vmul.f32 %v874_v51, %v870_v49 }
 0x574   :  { %v767_v36 = vmul.f32 %v766_v9, %v762_v37  ;;  %v905_v39 = vmul.f32 %v1257_v50, %v870_v49  ;;  %v842_v38 = vadd.f32 %v841_v53, %v840_v48  ;;  %v808_v0 = vadd.f32 %v807_v60, %v806_v46  ;;  %v1083_v49 = vld [vmem:[%s1627_s14] ss:$0 sm:$0xff] }
 0x575   :  { %v666_v42 = vadd.f32 %v665_v54, %v664_v33  ;;  %v700_v61 = vadd.f32 %v699_v56, %v698_v45  ;;  %v734_v62 = vadd.f32 %v733_v52, %v732_v47  ;;  %v876_v40 = vsel %vm250_vm2, %v875_v57, 0.0 }
 0x576   :  { %v768_v63 = vsel %vm250_vm2, %v767_v36, 0.0  ;;  %v906_v55 = vadd.f32 %v905_v39, %v1583_v59  ;;  %v877_v3 = vrot.slane %v876_v40, 4  ;;  %v809_v7 = vrot.slane %v808_v0, 1 }
 0x577   :  { %v769_v2 = vrot.slane %v768_v63, 4  ;;  %667 = vst [vmem:[#allocation3] sm:$0x1] %v666_v42  ;;  %v701_v4 = vrot.slane %v700_v61, 1  ;;  %v735_v5 = vrot.slane %v734_v62, 2  ;;  %v843_v8 = vrot.slane %v842_v38, 2 }
 0x578   :  { %v911_v6 = vmul.f32 %v910_v1, %v906_v55  ;;  %v878_v11 = vadd.f32 %v877_v3, %v876_v40  ;;  %v810_v13 = vadd.f32 %v809_v7, %v808_v0  ;;  %v232_v28 = vadd.f32 1.0, %v1259_v32 }
 0x579   :  { %v702_v9 = vadd.f32 %v701_v4, %v700_v61  ;;  %v736_v10 = vadd.f32 %v735_v5, %v734_v62  ;;  %v770_v58 = vadd.f32 %v769_v2, %v768_v63  ;;  %v844_v14 = vadd.f32 %v843_v8, %v842_v38 }
 0x57a   :  { %v912_v12 = vsel %vm250_vm2, %v911_v6, 0.0  ;;  %v879_v18 = vrot.slane %v878_v11, 2  ;;  %811 = vst [vmem:[#allocation3 + $0x4] sm:$0x1] %v810_v13  ;;  %v233_v41 = vmul.f32 0.5, %v232_v28  ;;  %v928_v33 = vmul.f32 %v1082_v44, %v1472_v15 }
 0x57b   :  { %v913_v59 = vrot.slane %v912_v12, 4  ;;  %703 = vst [vmem:[#allocation3 + $0x1] sm:$0x1] %v702_v9  ;;  %v737_v16 = vrot.slane %v736_v10, 1  ;;  %v771_v17 = vrot.slane %v770_v58, 2  ;;  %v845_v19 = vrot.slane %v844_v14, 1 }
 0x57c   :  { %v880_v23 = vadd.f32 %v879_v18, %v878_v11  ;;  %v234_v46 = vmul.f32 %v233_v41, %v1590_v21 }
 0x57d   :  { %v738_v20 = vadd.f32 %v737_v16, %v736_v10  ;;  %v772_v22 = vadd.f32 %v771_v17, %v770_v58  ;;  %v914_v35 = vadd.f32 %v913_v59, %v912_v12  ;;  %v846_v31 = vadd.f32 %v845_v19, %v844_v14 }
 0x57e   :  { %v881_v24 = vrot.slane %v880_v23, 1 }
 0x57f   :  { %739 = vst [vmem:[#allocation3 + $0x2] sm:$0x1] %v738_v20  ;;  %v773_v34 = vrot.slane %v772_v22, 1  ;;  %v915_v25 = vrot.slane %v914_v35, 2  ;;  %847 = vst [vmem:[#allocation3 + $0x5] sm:$0x1] %v846_v31 }
 0x580   :  { %v882_v27 = vadd.f32 %v881_v24, %v880_v23 }
 0x581   :  { %v774_v26 = vadd.f32 %v773_v34, %v772_v22  ;;  %v916_v29 = vadd.f32 %v915_v25, %v914_v35 }
 0x582   :  { %883 = vst [vmem:[#allocation3 + $0x6] sm:$0x1] %v882_v27 }
 0x583   :  { %775 = vst [vmem:[#allocation3 + $0x3] sm:$0x1] %v774_v26  ;;  %v917_v30 = vrot.slane %v916_v29, 1 }
 0x585   :  { %v918_v43 = vadd.f32 %v917_v30, %v916_v29 }
 0x587   :  { %919 = vst [vmem:[#allocation3 + $0x7] sm:$0x1] %v918_v43 }
 0x58e   :  { %v920_v45 = vld [vmem:[#allocation3] sm:$0xff] }
 0x58f   :  { %v929_v47 = vadd.f32 %v928_v33, %v920_v45 }
 0x591   :  { %v930_v37 = vmul.f32 %v929_v47, %v234_v46 }
 0x593   :  { %v931_v48 = vpack.c.bf16 %v930_v37, %v930_v37 }
 0x595   :  { %1174 = vmatmul.mubr.bf16.vlgmr.msra.gmra.mrb[4].mxu0 %v931_v48 }
 0x668   :  { %v1037_v50 = vpop.f32.mrb[4].mxu0 }
 0x669   :  { %v1038_v51 = vadd.f32 %v1083_v49, %v1037_v50  ;;  %v1175_v52 = vpop.f32.mrb[5].mxu0 }
 0x66a   :  { %v1040_v53 = vpop.f32.mrb[6].mxu0 }
 0x66b   :  { %1043 = vst [vmem:[%s1628_s15] sm:$0xff] %v1038_v51  ;;  %v1176_v15 = vpop.f32.mrb[7].mxu0 }

// kernel: u_mamba_block_downscale.7
= control target key start
LH: loop header
LB: loop body
LE: loop exit
PB: predicated region body
PF: predicated region fallthrough
CT: control target
= control target key end

     0   :  { %v350_v0 = vmov 0.0   ;;  %vm351_vm0 = vmmov 0   ;;  %v352_v4 = vmov 0   ;;  %vm126_vm1 = vcmask 125952   ;;  %s433_s0 = inlined_call_operand.vmem [shape: bf16[2,128,16], index: 0, kind: input, shape index: {}]   ;;  %s434_s2 = inlined_call_operand.vmem [shape: f32[4,1], index: 2, kind: input, shape index: {}]   ;;  %s435_s1 = inlined_call_operand.vmem [shape: bf16[4,128], index: 1, kind: input, shape index: {}]   ;;  %s436_s3 = inlined_call_operand.vmem [shape: f32[2,4,16], index: 3, kind: output, shape index: {}]  }
   0x1   :  { %290 = vmatprep.subr.bf16.mxu0 %v350_v0  ;;  %310 = vmatprep.subr.bf16.mxu1 %v350_v0  ;;  %v334_v1 = vld [vmem:[%s433_s0] sm:$0xff]   ;;  %v336_v3 = vld [vmem:[%s433_s0 + $0x8] sm:$0xff]   ;;  %v338_v6 = vld [vmem:[%s433_s0 + $0x10] sm:$0xff]  }
   0x2   :  { %v335_v2 = vld [vmem:[%s433_s0 + $0x40] sm:$0xff]   ;;  %306 = vmatprep.mubr.msk.bf16.mxu0 %vm351_vm0, %v350_v0  ;;  %326 = vmatprep.mubr.msk.bf16.mxu1 %vm351_vm0, %v350_v0  ;;  %v337_v5 = vld [vmem:[%s433_s0 + $0x48] sm:$0xff]   ;;  %v339_v7 = vld [vmem:[%s433_s0 + $0x50] sm:$0xff]  }
   0x3   :  { %291 = vmatpush3.bf16.msra.mxu0 %v334_v1  ;;  %333 = vset.pattern.permute.xlu0 %v352_v4  ;;  %v340_v8 = vld [vmem:[%s433_s0 + $0x18] sm:$0xff]   ;;  %v342_v10 = vld [vmem:[%s433_s0 + $0x20] sm:$0xff]   ;;  %v344_v13 = vld [vmem:[%s433_s0 + $0x28] sm:$0xff]  }
   0x4   :  { %311 = vmatpush3.bf16.msra.mxu1 %v335_v2  ;;  %292 = vmatprep.subr.bf16.mxu0 %v350_v0  ;;  %v341_v9 = vld [vmem:[%s433_s0 + $0x58] sm:$0xff]   ;;  %v343_v11 = vld [vmem:[%s433_s0 + $0x60] sm:$0xff]   ;;  %v345_v14 = vld [vmem:[%s433_s0 + $0x68] sm:$0xff]  }
   0x5   :  { %312 = vmatprep.subr.bf16.mxu1 %v350_v0  ;;  %v16_v12 = vld [vmem:[%s434_s2] sm:$0xf]  ;;  %v346_v15 = vld [vmem:[%s433_s0 + $0x30] sm:$0xff]   ;;  %v348_v17 = vld [vmem:[%s433_s0 + $0x38] sm:$0xff]  }
   0x6   :  { %35 = vperm.xlu0 %333, %v16_v12   ;;  %v347_v16 = vld [vmem:[%s433_s0 + $0x70] sm:$0xff]   ;;  %v349_v18 = vld [vmem:[%s433_s0 + $0x78] sm:$0xff]   ;;  %v15_v19 = vld [vmem:[%s435_s1] sm:$0x3] }
   0x7   :  { %293 = vmatpush3.bf16.msra.mxu0 %v336_v3 }
   0x8   :  { %313 = vmatpush3.bf16.msra.mxu1 %v337_v5  ;;  %294 = vmatprep.subr.bf16.mxu0 %v350_v0 }
   0x9   :  { %314 = vmatprep.subr.bf16.mxu1 %v350_v0 }
   0xb   :  { %295 = vmatpush3.bf16.msra.mxu0 %v338_v6 }
   0xc   :  { %315 = vmatpush3.bf16.msra.mxu1 %v339_v7  ;;  %296 = vmatprep.subr.bf16.mxu0 %v350_v0 }
   0xd   :  { %316 = vmatprep.subr.bf16.mxu1 %v350_v0 }
   0xf   :  { %297 = vmatpush3.bf16.msra.mxu0 %v340_v8 }
  0x10   :  { %317 = vmatpush3.bf16.msra.mxu1 %v341_v9  ;;  %298 = vmatprep.subr.bf16.mxu0 %v350_v0 }
  0x11   :  { %318 = vmatprep.subr.bf16.mxu1 %v350_v0 }
  0x13   :  { %299 = vmatpush3.bf16.msra.mxu0 %v342_v10 }
  0x14   :  { %319 = vmatpush3.bf16.msra.mxu1 %v343_v11  ;;  %300 = vmatprep.subr.bf16.mxu0 %v350_v0 }
  0x15   :  { %320 = vmatprep.subr.bf16.mxu1 %v350_v0 }
  0x17   :  { %301 = vmatpush3.bf16.msra.mxu0 %v344_v13 }
  0x18   :  { %321 = vmatpush3.bf16.msra.mxu1 %v345_v14  ;;  %302 = vmatprep.subr.bf16.mxu0 %v350_v0 }
  0x19   :  { %322 = vmatprep.subr.bf16.mxu1 %v350_v0 }
  0x1b   :  { %303 = vmatpush3.bf16.msra.mxu0 %v346_v15 }
  0x1c   :  { %323 = vmatpush3.bf16.msra.mxu1 %v347_v16  ;;  %304 = vmatprep.subr.bf16.mxu0 %v350_v0 }
  0x1d   :  { %324 = vmatprep.subr.bf16.mxu1 %v350_v0 }
  0x1f   :  { %305 = vmatpush3.bf16.msra.mxu0 %v348_v17 }
  0x20   :  { %325 = vmatpush3.bf16.msra.mxu1 %v349_v18 }
  0x22   :  { %307 = vmatmul.mubr.bf16.vlgmr.msra.gmra.mrb[0].mxu0 %v15_v19 }
  0x23   :  { %327 = vmatmul.mubr.bf16.vlgmr.msra.gmra.mrb[0].mxu1 %v15_v19 }
  0x85   :  { %v36_v20 = vpop.permute.xlu0 %35 }
  0xf5   :  { %v120_v21 = vpop.f32.mrb[0].mxu0 }
  0xf6   :  { %v121_v22 = vadd.f32 %v120_v21, %v36_v20  ;;  %v227_v23 = vpop.f32.mrb[0].mxu1  ;;  %v308_v24 = vpop.f32.mrb[1].mxu0 }
  0xf7   :  { %v228_v25 = vadd.f32 %v227_v23, %v36_v20  ;;  %v328_v26 = vpop.f32.mrb[1].mxu1  ;;  %v123_v27 = vpop.f32.mrb[2].mxu0 }
  0xf8   :  { %127 = vst.msk [vmem:[%s436_s3] sm:$0xf] %vm126_vm1, %v121_v22  ;;  %v230_v28 = vpop.f32.mrb[2].mxu1  ;;  %v309_v29 = vpop.f32.mrb[3].mxu0 }
  0xf9   :  { %271 = vst.msk [vmem:[%s436_s3 + $0x4] sm:$0xf] %vm126_vm1, %v228_v25  ;;  %v329_v30 = vpop.f32.mrb[3].mxu1 }

</bundles_post_ra>
